<compile_context>
chip_gen: v7x
topology: tpu7x:2x2x1
jax: 0.10.0
libtpu: 0.0.40
codegen_flags: <defaults>
</compile_context>

<pallas_src>
import jax
import jax.numpy as jnp
import numpy as np
from jax import lax
from jax.experimental import pallas as pl
from jax.experimental.pallas import tpu as pltpu

LN_EPS = 1e-5  # torch.nn.LayerNorm default


def _silu(x):
    return x * jax.nn.sigmoid(x)


def _layer_norm(x, gamma, beta):
    mu = jnp.mean(x, axis=-1, keepdims=True)
    var = jnp.mean((x - mu) ** 2, axis=-1, keepdims=True)
    return (x - mu) * lax.rsqrt(var + LN_EPS) * gamma + beta


def _mxu(a, b):
    """MXU matmul: bf16 operands, f32 accumulation."""
    return jnp.dot(a.astype(jnp.bfloat16), b.astype(jnp.bfloat16),
                   preferred_element_type=jnp.float32)


def egcl_kernel(row_s_ref, col_s_ref, row_l_ref,          # edge indices (tiled per grid step)
                h_ref, coord_ref,                          # node-level inputs (resident)
                gn_ref, bn_ref, ge_ref, be_ref,            # LayerNorm params
                we1s_ref, we1t_ref, we1r_ref, be1_ref,     # edge MLP layer 1 (split concat)
                we2_ref, be2_ref,                          # edge MLP layer 2
                wn1x_ref, wn1e_ref, bn1_ref, wn2_ref, bn2_ref,  # node MLP (split concat)
                wc1_ref, bc1_ref, wc2t_ref,                # coord MLP
                out_ref,                                   # packed [h_out | coord_out | pad]
                hc_ref, acc_ref):                          # VMEM scratch
    f32 = jnp.float32
    bf16 = jnp.bfloat16

    t = pl.program_id(0)
    n_tiles = pl.num_programs(0)

    N, F = h_ref.shape
    H = we2_ref.shape[0]
    O = wn2_ref.shape[1]
    TE = row_s_ref.shape[0]

    # ---- first edge tile: LayerNorm(h) once, build the bf16 gather table
    #      [h_ln | coord] and zero the fused segment-sum accumulator --------------------
    @pl.when(t == 0)
    def _init():
        h_ln = _layer_norm(h_ref[...], gn_ref[...], bn_ref[...])
        hc_ref[...] = jnp.concatenate([h_ln, coord_ref[...]], axis=-1).astype(bf16)
        acc_ref[...] = jnp.zeros_like(acc_ref)

    # ---- per-tile one-hot selectors (bf16, rebuilt each tile, never O(E*N) live) ------
    # padded edges carry index N -> all-zero one-hot row -> contribute nothing.
    row_s = row_s_ref[...]                                     # (TE, 1) int32
    col_s = col_s_ref[...]                                     # (TE, 1) int32
    row_l = row_l_ref[...]                                     # (1, TE) int32
    iota_en = lax.broadcasted_iota(jnp.int32, (TE, N), 1)
    iota_ne = lax.broadcasted_iota(jnp.int32, (N, TE), 0)
    row_oh = (iota_en == row_s).astype(bf16)                   # (TE, N)  gather h[row]
    col_oh = (iota_en == col_s).astype(bf16)                   # (TE, N)  gather h[col]
    row_ohT = (iota_ne == row_l).astype(bf16)                  # (N, TE)  scatter-add by row

    # ---- fused gather of [h_ln | coord] for source and target nodes -------------------
    hc = hc_ref[...]                                           # (N, F+3) bf16
    g_row = jnp.dot(row_oh, hc, preferred_element_type=f32)    # (TE, F+3)
    g_col = jnp.dot(col_oh, hc, preferred_element_type=f32)
    h_row, c_row = g_row[:, :F], g_row[:, F:]
    h_col, c_col = g_col[:, :F], g_col[:, F:]
    coord_diff = c_row - c_col                                 # (TE, 3) f32
    radial = jnp.sum(coord_diff * coord_diff, axis=-1, keepdims=True)   # (TE, 1)

    # ---- edge MLP: SiLU(W2 SiLU(W1 [src|tgt|radial] + b1) + b2), then edge LayerNorm --
    e1 = _silu(_mxu(h_row, we1s_ref[...]) + _mxu(h_col, we1t_ref[...])
               + radial * we1r_ref[...] + be1_ref[...])
    e2 = _silu(_mxu(e1, we2_ref[...]) + be2_ref[...])
    edge_feat = _layer_norm(e2, ge_ref[...], be_ref[...])      # (TE, H) f32

    # ---- coord MLP (tanh=False): trans = coord_diff * (w2 . SiLU(W1 ef + b1)) ---------
    c1 = _silu(_mxu(edge_feat, wc1_ref[...]) + bc1_ref[...])
    cm = jnp.sum(c1 * wc2t_ref[...], axis=-1, keepdims=True)   # (TE, 1)  VPU + lane reduce
    trans = coord_diff * cm                                    # (TE, 3)

    # ---- fused scatter-add over target nodes: [edge_feat | trans | 1] -----------------
    payload = jnp.concatenate(
        [edge_feat, trans, jnp.ones((TE, 1), f32)], axis=-1).astype(bf16)   # (TE, H+4)
    acc_ref[...] += jnp.dot(row_ohT, payload, preferred_element_type=f32)   # (N, H+4)

    # ---- last edge tile: coord update + node MLP + residual, lane-dense packed store --
    @pl.when(t == n_tiles - 1)
    def _finalize():
        acc = acc_ref[...]                                     # (N, H+4) f32
        e_agg = acc[:, :H]                                     # segment_sum(edge_feat)
        agg_sum = acc[:, H:H + 3]                              # segment_sum(trans)
        counts = acc[:, H + 3:H + 4]                           # per-node edge counts
        coord_out = coord_ref[...] + agg_sum / jnp.maximum(counts, 1.0)   # 'mean' agg

        h_ln_b = hc_ref[...][:, :F]                            # bf16 LayerNorm(h), reused
        n1 = _silu(_mxu(h_ln_b, wn1x_ref[...]) + _mxu(e_agg, wn1e_ref[...]) + bn1_ref[...])
        h_out = h_ref[...] + _mxu(n1, wn2_ref[...]) + bn2_ref[...]        # residual=True

        pieces = [h_out, coord_out]
        pad_w = out_ref.shape[1] - O - 3
        if pad_w > 0:
            pieces.append(jnp.zeros((N, pad_w), f32))
        out_ref[...] = jnp.concatenate(pieces, axis=-1)        # single unmasked store


def egcl_forward(h, coord, row, col, params, *, edge_tile=256):
    """h: (N,F) f32, coord: (N,3) f32, row/col: (E,) int, params: see make_params."""
    N, F = h.shape
    H = params["we2"].shape[0]
    O = params["wn2"].shape[1]
    E = row.shape[0]

    te = int(edge_tile)
    n_tiles = int(pl.cdiv(E, te))
    e_pad = n_tiles * te
    pad_e = e_pad - E

    def pad_idx(idx):
        idx = idx.astype(jnp.int32)
        if pad_e:
            idx = jnp.concatenate([idx, jnp.full((pad_e,), N, jnp.int32)])
        return idx

    row_p, col_p = pad_idx(row), pad_idx(col)

    bf = lambda w: jnp.asarray(w, jnp.bfloat16)
    f32 = lambda w: jnp.asarray(w, jnp.float32)

    out_w = ((O + 3 + 127) // 128) * 128      # lane-dense packed output width

    operands = [
        row_p.reshape(e_pad, 1),              # sublane layout -> gather one-hots
        col_p.reshape(e_pad, 1),
        row_p.reshape(1, e_pad),              # lane layout    -> scatter one-hot (no .T)
        f32(h), f32(coord),
        f32(params["gn"]), f32(params["bn"]), f32(params["ge"]), f32(params["be"]),
        bf(params["we1_src"]), bf(params["we1_tgt"]),
        f32(params["we1_rad"]), f32(params["be1"]),
        bf(params["we2"]), f32(params["be2"]),
        bf(params["wn1_x"]), bf(params["wn1_e"]), f32(params["bn1"]),
        bf(params["wn2"]), f32(params["bn2"]),
        bf(params["wc1"]), f32(params["bc1"]),
        f32(params["wc2"]).reshape(1, H),     # row vector -> VPU dot, no 1-lane MXU op
    ]

    def node_spec(x):
        nd = x.ndim
        return pl.BlockSpec(x.shape, lambda t, nd=nd: (0,) * nd)   # resident across tiles

    in_specs = [
        pl.BlockSpec((te, 1), lambda t: (t, 0)),
        pl.BlockSpec((te, 1), lambda t: (t, 0)),
        pl.BlockSpec((1, te), lambda t: (0, t)),
    ] + [node_spec(x) for x in operands[3:]]

    packed = pl.pallas_call(
        egcl_kernel,
        out_shape=jax.ShapeDtypeStruct((N, out_w), jnp.float32),
        grid_spec=pltpu.PrefetchScalarGridSpec(
            num_scalar_prefetch=0,
            grid=(n_tiles,),
            in_specs=in_specs,
            out_specs=pl.BlockSpec((N, out_w), lambda t: (0, 0)),
            scratch_shapes=[
                pltpu.VMEM((N, F + 3), jnp.bfloat16),   # [LayerNorm(h) | coord] table
                pltpu.VMEM((N, H + 4), jnp.float32),    # [e_agg | coord agg | counts]
            ],
        ),
        compiler_params=pltpu.CompilerParams(
            dimension_semantics=("arbitrary",),         # edge-tile axis is a reduction
        ),
    )(*operands)

    return packed[:, :O], packed[:, O:O + 3]


def egcl_reference(h, coord, row, col, params):
    """Pure-JAX f32 reference with identical semantics to the PyTorch module."""
    def ln(x, g, b):
        mu = jnp.mean(x, axis=-1, keepdims=True)
        var = jnp.mean((x - mu) ** 2, axis=-1, keepdims=True)
        return (x - mu) / jnp.sqrt(var + LN_EPS) * g + b

    dot = lambda a, b: jnp.dot(a, b, precision=lax.Precision.HIGHEST)
    N = h.shape[0]
    h0 = h
    coord_diff = coord[row] - coord[col]
    radial = jnp.sum(coord_diff ** 2, axis=1, keepdims=True)

    h_ln = ln(h, params["gn"], params["bn"])
    hr, hc = h_ln[row], h_ln[col]
    e1 = jax.nn.silu(dot(hr, params["we1_src"]) + dot(hc, params["we1_tgt"])
                     + radial * params["we1_rad"] + params["be1"])
    e2 = jax.nn.silu(dot(e1, params["we2"]) + params["be2"])
    edge_feat = ln(e2, params["ge"], params["be"])

    c1 = jax.nn.silu(dot(edge_feat, params["wc1"]) + params["bc1"])
    cm = dot(c1, params["wc2"])
    trans = coord_diff * cm
    agg_sum = jnp.zeros((N, 3), jnp.float32).at[row].add(trans)
    count = jnp.zeros((N, 3), jnp.float32).at[row].add(jnp.ones_like(trans))
    coord_out = coord + agg_sum / jnp.maximum(count, 1.0)

    e_agg = jnp.zeros((N, edge_feat.shape[1]), jnp.float32).at[row].add(edge_feat)
    n1 = jax.nn.silu(dot(h_ln, params["wn1_x"]) + dot(e_agg, params["wn1_e"]) + params["bn1"])
    h_out = h0 + dot(n1, params["wn2"]) + params["bn2"]
    return h_out, coord_out


def make_params(key, input_nf, output_nf, hidden_nf):
    keys = jax.random.split(key, 16)
    r = lambda k, shp, s=0.1: (s * jax.random.normal(k, shp)).astype(jnp.float32)
    return {
        # LayerNorms (torch default init: ones/zeros)
        "gn": jnp.ones((1, input_nf), jnp.float32),
        "bn": jnp.zeros((1, input_nf), jnp.float32),
        "ge": jnp.ones((1, hidden_nf), jnp.float32),
        "be": jnp.zeros((1, hidden_nf), jnp.float32),
        # edge_mlp: Linear(2F+1 -> H) split into [src | tgt | radial], then Linear(H -> H)
        "we1_src": r(keys[0], (input_nf, hidden_nf)),
        "we1_tgt": r(keys[1], (input_nf, hidden_nf)),
        "we1_rad": r(keys[2], (1, hidden_nf)),
        "be1": r(keys[3], (1, hidden_nf)),
        "we2": r(keys[4], (hidden_nf, hidden_nf)),
        "be2": r(keys[5], (1, hidden_nf)),
        # node_mlp: Linear(F+H -> H) split into [x | agg], then Linear(H -> O)
        "wn1_x": r(keys[6], (input_nf, hidden_nf)),
        "wn1_e": r(keys[7], (hidden_nf, hidden_nf)),
        "bn1": r(keys[8], (1, hidden_nf)),
        "wn2": r(keys[9], (hidden_nf, output_nf)),
        "bn2": r(keys[10], (1, output_nf)),
        # coord_mlp: Linear(H -> H), SiLU, Linear(H -> 1, bias=False, xavier gain=0.001)
        "wc1": r(keys[11], (hidden_nf, hidden_nf)),
        "bc1": r(keys[12], (1, hidden_nf)),
        "wc2": r(keys[13], (hidden_nf, 1), s=0.001),
    }


if __name__ == "__main__":
    N = 16         # nodes
    F = 32         # input_nf == output_nf
    H = 32         # hidden_nf

    key = jax.random.PRNGKey(0)
    k_h, k_c, k_p = jax.random.split(key, 3)

    h = (0.5 * jax.random.normal(k_h, (N, F))).astype(jnp.float32)
    coord = jax.random.normal(k_c, (N, 3)).astype(jnp.float32)

    # fully-connected edge list without self loops: E = N*(N-1) = 240
    rows, cols = [], []
    for i in range(N):
        for j in range(N):
            if i != j:
                rows.append(i)
                cols.append(j)
    row = jnp.asarray(rows, dtype=jnp.int32)
    col = jnp.asarray(cols, dtype=jnp.int32)

    params = make_params(k_p, F, F, H)

    # edge_tile=128 -> 2 edge tiles (exercises the accumulate-across-grid path + padding)
    h_out, coord_out = egcl_forward(h, coord, row, col, params, edge_tile=128)
    jax.block_until_ready((h_out, coord_out))

    h_ref, coord_ref = egcl_reference(h, coord, row, col, params)
    jax.block_until_ready((h_ref, coord_ref))

    # bf16 MXU operands vs f32 HIGHEST-precision reference -> relaxed tolerance.
    if not np.allclose(np.asarray(h_out), np.asarray(h_ref), atol=7.5e-2, rtol=7.5e-2):
        raise AssertionError("h mismatch vs reference")
    if not np.allclose(np.asarray(coord_out), np.asarray(coord_ref), atol=7.5e-2, rtol=7.5e-2):
        raise AssertionError("coord mismatch vs reference")

    print("KERNEL_OK")
</pallas_src>

<mosaic_0001>
module attributes {stable_mosaic.version = 11 : i64} {
  func.func @egcl_kernel(%arg0: i32, %arg1: memref<128x1xi32, #tpu.memory_space<vmem>>, %arg2: memref<128x1xi32, #tpu.memory_space<vmem>>, %arg3: memref<1x128xi32, #tpu.memory_space<vmem>>, %arg4: memref<16x32xf32, #tpu.memory_space<vmem>>, %arg5: memref<16x3xf32, #tpu.memory_space<vmem>>, %arg6: memref<1x32xf32, #tpu.memory_space<vmem>>, %arg7: memref<1x32xf32, #tpu.memory_space<vmem>>, %arg8: memref<1x32xf32, #tpu.memory_space<vmem>>, %arg9: memref<1x32xf32, #tpu.memory_space<vmem>>, %arg10: memref<32x32xbf16, #tpu.memory_space<vmem>>, %arg11: memref<32x32xbf16, #tpu.memory_space<vmem>>, %arg12: memref<1x32xf32, #tpu.memory_space<vmem>>, %arg13: memref<1x32xf32, #tpu.memory_space<vmem>>, %arg14: memref<32x32xbf16, #tpu.memory_space<vmem>>, %arg15: memref<1x32xf32, #tpu.memory_space<vmem>>, %arg16: memref<32x32xbf16, #tpu.memory_space<vmem>>, %arg17: memref<32x32xbf16, #tpu.memory_space<vmem>>, %arg18: memref<1x32xf32, #tpu.memory_space<vmem>>, %arg19: memref<32x32xbf16, #tpu.memory_space<vmem>>, %arg20: memref<1x32xf32, #tpu.memory_space<vmem>>, %arg21: memref<32x32xbf16, #tpu.memory_space<vmem>>, %arg22: memref<1x32xf32, #tpu.memory_space<vmem>>, %arg23: memref<1x32xf32, #tpu.memory_space<vmem>>, %arg24: memref<16x128xf32, #tpu.memory_space<vmem>>, %arg25: memref<16x35xbf16, #tpu.memory_space<vmem>>, %arg26: memref<16x36xf32, #tpu.memory_space<vmem>>) attributes {dimension_semantics = [#tpu.dimension_semantics<arbitrary>], iteration_bounds = array<i64: 2>, scalar_prefetch = 0 : i64, scratch_operands = 2 : i64, tpu.core_type = #tpu.core_type<tc>, window_params = [{transform_indices = @transform_0, window_bounds = array<i64: 128, 1>}, {transform_indices = @transform_1, window_bounds = array<i64: 128, 1>}, {transform_indices = @transform_2, window_bounds = array<i64: 1, 128>}, {pipeline_mode = #tpu.pipeline_mode<synchronous>, transform_indices = @transform_3, window_bounds = array<i64: 16, 32>}, {pipeline_mode = #tpu.pipeline_mode<synchronous>, transform_indices = @transform_4, window_bounds = array<i64: 16, 3>}, {pipeline_mode = #tpu.pipeline_mode<synchronous>, transform_indices = @transform_5, window_bounds = array<i64: 1, 32>}, {pipeline_mode = #tpu.pipeline_mode<synchronous>, transform_indices = @transform_6, window_bounds = array<i64: 1, 32>}, {pipeline_mode = #tpu.pipeline_mode<synchronous>, transform_indices = @transform_7, window_bounds = array<i64: 1, 32>}, {pipeline_mode = #tpu.pipeline_mode<synchronous>, transform_indices = @transform_8, window_bounds = array<i64: 1, 32>}, {pipeline_mode = #tpu.pipeline_mode<synchronous>, transform_indices = @transform_9, window_bounds = array<i64: 32, 32>}, {pipeline_mode = #tpu.pipeline_mode<synchronous>, transform_indices = @transform_10, window_bounds = array<i64: 32, 32>}, {pipeline_mode = #tpu.pipeline_mode<synchronous>, transform_indices = @transform_11, window_bounds = array<i64: 1, 32>}, {pipeline_mode = #tpu.pipeline_mode<synchronous>, transform_indices = @transform_12, window_bounds = array<i64: 1, 32>}, {pipeline_mode = #tpu.pipeline_mode<synchronous>, transform_indices = @transform_13, window_bounds = array<i64: 32, 32>}, {pipeline_mode = #tpu.pipeline_mode<synchronous>, transform_indices = @transform_14, window_bounds = array<i64: 1, 32>}, {pipeline_mode = #tpu.pipeline_mode<synchronous>, transform_indices = @transform_15, window_bounds = array<i64: 32, 32>}, {pipeline_mode = #tpu.pipeline_mode<synchronous>, transform_indices = @transform_16, window_bounds = array<i64: 32, 32>}, {pipeline_mode = #tpu.pipeline_mode<synchronous>, transform_indices = @transform_17, window_bounds = array<i64: 1, 32>}, {pipeline_mode = #tpu.pipeline_mode<synchronous>, transform_indices = @transform_18, window_bounds = array<i64: 32, 32>}, {pipeline_mode = #tpu.pipeline_mode<synchronous>, transform_indices = @transform_19, window_bounds = array<i64: 1, 32>}, {pipeline_mode = #tpu.pipeline_mode<synchronous>, transform_indices = @transform_20, window_bounds = array<i64: 32, 32>}, {pipeline_mode = #tpu.pipeline_mode<synchronous>, transform_indices = @transform_21, window_bounds = array<i64: 1, 32>}, {pipeline_mode = #tpu.pipeline_mode<synchronous>, transform_indices = @transform_22, window_bounds = array<i64: 1, 32>}, {pipeline_mode = #tpu.pipeline_mode<synchronous>, transform_indices = @transform_23, window_bounds = array<i64: 16, 128>}]} {
    %c0_i32 = arith.constant 0 : i32
    %0 = arith.cmpi eq, %arg0, %c0_i32 : i32
    %1 = arith.extui %0 : i1 to i32
    %c0_i32_0 = arith.constant 0 : i32
    %2 = arith.cmpi ne, %1, %c0_i32_0 : i32
    scf.if %2 {
      %c0_52 = arith.constant 0 : index
      %c0_53 = arith.constant 0 : index
      %120 = vector.load %arg4[%c0_52, %c0_53] : memref<16x32xf32, #tpu.memory_space<vmem>>, vector<16x32xf32>
      %c0_54 = arith.constant 0 : index
      %c0_55 = arith.constant 0 : index
      %121 = vector.load %arg6[%c0_54, %c0_55] : memref<1x32xf32, #tpu.memory_space<vmem>>, vector<1x32xf32>
      %c0_56 = arith.constant 0 : index
      %c0_57 = arith.constant 0 : index
      %122 = vector.load %arg7[%c0_56, %c0_57] : memref<1x32xf32, #tpu.memory_space<vmem>>, vector<1x32xf32>
      %cst_58 = arith.constant dense<0.000000e+00> : vector<16xf32>
      %123 = vector.multi_reduction <add>, %120, %cst_58 [1] : vector<16x32xf32> to vector<16xf32>
      %124 = vector.shape_cast %123 : vector<16xf32> to vector<16x1xf32>
      %cst_59 = arith.constant 3.200000e+01 : f32
      %125 = vector.broadcast %cst_59 : f32 to vector<16x1xf32>
      %126 = arith.divf %124, %125 : vector<16x1xf32>
      %127 = vector.broadcast %126 : vector<16x1xf32> to vector<16x32xf32>
      %128 = arith.subf %120, %127 : vector<16x32xf32>
      %129 = arith.mulf %128, %128 : vector<16x32xf32>
      %cst_60 = arith.constant dense<0.000000e+00> : vector<16xf32>
      %130 = vector.multi_reduction <add>, %129, %cst_60 [1] : vector<16x32xf32> to vector<16xf32>
      %131 = vector.shape_cast %130 : vector<16xf32> to vector<16x1xf32>
      %cst_61 = arith.constant 3.200000e+01 : f32
      %132 = vector.broadcast %cst_61 : f32 to vector<16x1xf32>
      %133 = arith.divf %131, %132 : vector<16x1xf32>
      %134 = vector.broadcast %126 : vector<16x1xf32> to vector<16x32xf32>
      %135 = arith.subf %120, %134 : vector<16x32xf32>
      %cst_62 = arith.constant 9.99999974E-6 : f32
      %136 = vector.broadcast %cst_62 : f32 to vector<16x1xf32>
      %137 = arith.addf %133, %136 : vector<16x1xf32>
      %138 = math.rsqrt %137 : vector<16x1xf32>
      %139 = vector.broadcast %138 : vector<16x1xf32> to vector<16x32xf32>
      %140 = arith.mulf %135, %139 : vector<16x32xf32>
      %141 = vector.broadcast %121 : vector<1x32xf32> to vector<16x32xf32>
      %142 = arith.mulf %140, %141 : vector<16x32xf32>
      %143 = vector.broadcast %122 : vector<1x32xf32> to vector<16x32xf32>
      %144 = arith.addf %142, %143 : vector<16x32xf32>
      %c0_63 = arith.constant 0 : index
      %c0_64 = arith.constant 0 : index
      %145 = vector.load %arg5[%c0_63, %c0_64] : memref<16x3xf32, #tpu.memory_space<vmem>>, vector<16x3xf32>
      %146 = tpu.concatenate %144, %145 in 1 : vector<16x32xf32>, vector<16x3xf32> -> vector<16x35xf32>
      %147 = arith.truncf %146 : vector<16x35xf32> to vector<16x35xbf16>
      %c0_65 = arith.constant 0 : index
      %c0_66 = arith.constant 0 : index
      %148 = vector.load %arg25[%c0_65, %c0_66] : memref<16x35xbf16, #tpu.memory_space<vmem>>, vector<16x35xbf16>
      tpu.vector_store %arg25[%c0_65, %c0_66], %147 {strides = array<i32>} : memref<16x35xbf16, #tpu.memory_space<vmem>>, vector<16x35xbf16>,
      %cst_67 = arith.constant 0.000000e+00 : f32
      %149 = vector.broadcast %cst_67 : f32 to vector<16x36xf32>
      %c0_68 = arith.constant 0 : index
      %c0_69 = arith.constant 0 : index
      %150 = vector.load %arg26[%c0_68, %c0_69] : memref<16x36xf32, #tpu.memory_space<vmem>>, vector<16x36xf32>
      tpu.vector_store %arg26[%c0_68, %c0_69], %149 {strides = array<i32>} : memref<16x36xf32, #tpu.memory_space<vmem>>, vector<16x36xf32>,
    } else {
    }
    %c0 = arith.constant 0 : index
    %c0_1 = arith.constant 0 : index
    %3 = vector.load %arg1[%c0, %c0_1] : memref<128x1xi32, #tpu.memory_space<vmem>>, vector<128x1xi32>
    %c0_2 = arith.constant 0 : index
    %c0_3 = arith.constant 0 : index
    %4 = vector.load %arg2[%c0_2, %c0_3] : memref<128x1xi32, #tpu.memory_space<vmem>>, vector<128x1xi32>
    %c0_4 = arith.constant 0 : index
    %c0_5 = arith.constant 0 : index
    %5 = vector.load %arg3[%c0_4, %c0_5] : memref<1x128xi32, #tpu.memory_space<vmem>>, vector<1x128xi32>
    %6 = tpu.iota {dimensions = array<i32: 1>} : vector<128x16xi32>
    %7 = tpu.iota {dimensions = array<i32: 0>} : vector<16x128xi32>
    %8 = vector.broadcast %3 : vector<128x1xi32> to vector<128x16xi32>
    %9 = arith.cmpi eq, %6, %8 : vector<128x16xi32>
    %10 = arith.extui %9 : vector<128x16xi1> to vector<128x16xi32>
    %11 = arith.sitofp %10 : vector<128x16xi32> to vector<128x16xf32>
    %12 = arith.truncf %11 : vector<128x16xf32> to vector<128x16xbf16>
    %13 = vector.broadcast %4 : vector<128x1xi32> to vector<128x16xi32>
    %14 = arith.cmpi eq, %6, %13 : vector<128x16xi32>
    %15 = arith.extui %14 : vector<128x16xi1> to vector<128x16xi32>
    %16 = arith.sitofp %15 : vector<128x16xi32> to vector<128x16xf32>
    %17 = arith.truncf %16 : vector<128x16xf32> to vector<128x16xbf16>
    %18 = vector.broadcast %5 : vector<1x128xi32> to vector<16x128xi32>
    %19 = arith.cmpi eq, %7, %18 : vector<16x128xi32>
    %20 = arith.extui %19 : vector<16x128xi1> to vector<16x128xi32>
    %21 = arith.sitofp %20 : vector<16x128xi32> to vector<16x128xf32>
    %22 = arith.truncf %21 : vector<16x128xf32> to vector<16x128xbf16>
    %c0_6 = arith.constant 0 : index
    %c0_7 = arith.constant 0 : index
    %23 = vector.load %arg25[%c0_6, %c0_7] : memref<16x35xbf16, #tpu.memory_space<vmem>>, vector<16x35xbf16>
    %cst = arith.constant dense<0.000000e+00> : vector<128x35xf32>
    %24 = tpu.matmul %12, %23, %cst {dimension_numbers = #tpu.dot_dimension_numbers<[1], [0], [0], [1], [0, 0, 1, 1], [], []>} : vector<128x16xbf16>, vector<16x35xbf16>, vector<128x35xf32> -> vector<128x35xf32>
    %cst_8 = arith.constant dense<0.000000e+00> : vector<128x35xf32>
    %25 = tpu.matmul %17, %23, %cst_8 {dimension_numbers = #tpu.dot_dimension_numbers<[1], [0], [0], [1], [0, 0, 1, 1], [], []>} : vector<128x16xbf16>, vector<16x35xbf16>, vector<128x35xf32> -> vector<128x35xf32>
    %26 = vector.extract_strided_slice %24 {offsets = [0, 0], sizes = [128, 32], strides = [1, 1]} : vector<128x35xf32> to vector<128x32xf32>
    %27 = vector.extract_strided_slice %24 {offsets = [0, 32], sizes = [128, 3], strides = [1, 1]} : vector<128x35xf32> to vector<128x3xf32>
    %28 = vector.extract_strided_slice %25 {offsets = [0, 0], sizes = [128, 32], strides = [1, 1]} : vector<128x35xf32> to vector<128x32xf32>
    %29 = vector.extract_strided_slice %25 {offsets = [0, 32], sizes = [128, 3], strides = [1, 1]} : vector<128x35xf32> to vector<128x3xf32>
    %30 = arith.subf %27, %29 : vector<128x3xf32>
    %31 = arith.mulf %30, %30 : vector<128x3xf32>
    %cst_9 = arith.constant dense<0.000000e+00> : vector<128xf32>
    %32 = vector.multi_reduction <add>, %31, %cst_9 [1] : vector<128x3xf32> to vector<128xf32>
    %33 = vector.shape_cast %32 : vector<128xf32> to vector<128x1xf32>
    %c0_10 = arith.constant 0 : index
    %c0_11 = arith.constant 0 : index
    %34 = vector.load %arg10[%c0_10, %c0_11] : memref<32x32xbf16, #tpu.memory_space<vmem>>, vector<32x32xbf16>
    %35 = arith.truncf %26 : vector<128x32xf32> to vector<128x32xbf16>
    %cst_12 = arith.constant dense<0.000000e+00> : vector<128x32xf32>
    %36 = tpu.matmul %35, %34, %cst_12 {dimension_numbers = #tpu.dot_dimension_numbers<[1], [0], [0], [1], [0, 0, 1, 1], [], []>} : vector<128x32xbf16>, vector<32x32xbf16>, vector<128x32xf32> -> vector<128x32xf32>
    %c0_13 = arith.constant 0 : index
    %c0_14 = arith.constant 0 : index
    %37 = vector.load %arg11[%c0_13, %c0_14] : memref<32x32xbf16, #tpu.memory_space<vmem>>, vector<32x32xbf16>
    %38 = arith.truncf %28 : vector<128x32xf32> to vector<128x32xbf16>
    %cst_15 = arith.constant dense<0.000000e+00> : vector<128x32xf32>
    %39 = tpu.matmul %38, %37, %cst_15 {dimension_numbers = #tpu.dot_dimension_numbers<[1], [0], [0], [1], [0, 0, 1, 1], [], []>} : vector<128x32xbf16>, vector<32x32xbf16>, vector<128x32xf32> -> vector<128x32xf32>
    %40 = arith.addf %36, %39 : vector<128x32xf32>
    %c0_16 = arith.constant 0 : index
    %c0_17 = arith.constant 0 : index
    %41 = vector.load %arg12[%c0_16, %c0_17] : memref<1x32xf32, #tpu.memory_space<vmem>>, vector<1x32xf32>
    %42 = vector.broadcast %33 : vector<128x1xf32> to vector<128x32xf32>
    %43 = vector.broadcast %41 : vector<1x32xf32> to vector<128x32xf32>
    %44 = arith.mulf %42, %43 : vector<128x32xf32>
    %45 = arith.addf %40, %44 : vector<128x32xf32>
    %c0_18 = arith.constant 0 : index
    %c0_19 = arith.constant 0 : index
    %46 = vector.load %arg13[%c0_18, %c0_19] : memref<1x32xf32, #tpu.memory_space<vmem>>, vector<1x32xf32>
    %47 = vector.broadcast %46 : vector<1x32xf32> to vector<128x32xf32>
    %48 = arith.addf %45, %47 : vector<128x32xf32>
    %49 = arith.negf %48 : vector<128x32xf32>
    %50 = math.exp %49 : vector<128x32xf32>
    %cst_20 = arith.constant 1.000000e+00 : f32
    %51 = vector.broadcast %cst_20 : f32 to vector<128x32xf32>
    %52 = arith.addf %51, %50 : vector<128x32xf32>
    %53 = arith.divf %51, %52 : vector<128x32xf32>
    %54 = arith.mulf %48, %53 : vector<128x32xf32>
    %c0_21 = arith.constant 0 : index
    %c0_22 = arith.constant 0 : index
    %55 = vector.load %arg14[%c0_21, %c0_22] : memref<32x32xbf16, #tpu.memory_space<vmem>>, vector<32x32xbf16>
    %56 = arith.truncf %54 : vector<128x32xf32> to vector<128x32xbf16>
    %cst_23 = arith.constant dense<0.000000e+00> : vector<128x32xf32>
    %57 = tpu.matmul %56, %55, %cst_23 {dimension_numbers = #tpu.dot_dimension_numbers<[1], [0], [0], [1], [0, 0, 1, 1], [], []>} : vector<128x32xbf16>, vector<32x32xbf16>, vector<128x32xf32> -> vector<128x32xf32>
    %c0_24 = arith.constant 0 : index
    %c0_25 = arith.constant 0 : index
    %58 = vector.load %arg15[%c0_24, %c0_25] : memref<1x32xf32, #tpu.memory_space<vmem>>, vector<1x32xf32>
    %59 = vector.broadcast %58 : vector<1x32xf32> to vector<128x32xf32>
    %60 = arith.addf %57, %59 : vector<128x32xf32>
    %61 = arith.negf %60 : vector<128x32xf32>
    %62 = math.exp %61 : vector<128x32xf32>
    %cst_26 = arith.constant 1.000000e+00 : f32
    %63 = vector.broadcast %cst_26 : f32 to vector<128x32xf32>
    %64 = arith.addf %63, %62 : vector<128x32xf32>
    %65 = arith.divf %63, %64 : vector<128x32xf32>
    %66 = arith.mulf %60, %65 : vector<128x32xf32>
    %c0_27 = arith.constant 0 : index
    %c0_28 = arith.constant 0 : index
    %67 = vector.load %arg8[%c0_27, %c0_28] : memref<1x32xf32, #tpu.memory_space<vmem>>, vector<1x32xf32>
    %c0_29 = arith.constant 0 : index
    %c0_30 = arith.constant 0 : index
    %68 = vector.load %arg9[%c0_29, %c0_30] : memref<1x32xf32, #tpu.memory_space<vmem>>, vector<1x32xf32>
    %cst_31 = arith.constant dense<0.000000e+00> : vector<128xf32>
    %69 = vector.multi_reduction <add>, %66, %cst_31 [1] : vector<128x32xf32> to vector<128xf32>
    %70 = vector.shape_cast %69 : vector<128xf32> to vector<128x1xf32>
    %cst_32 = arith.constant 3.200000e+01 : f32
    %71 = vector.broadcast %cst_32 : f32 to vector<128x1xf32>
    %72 = arith.divf %70, %71 : vector<128x1xf32>
    %73 = vector.broadcast %72 : vector<128x1xf32> to vector<128x32xf32>
    %74 = arith.subf %66, %73 : vector<128x32xf32>
    %75 = arith.mulf %74, %74 : vector<128x32xf32>
    %cst_33 = arith.constant dense<0.000000e+00> : vector<128xf32>
    %76 = vector.multi_reduction <add>, %75, %cst_33 [1] : vector<128x32xf32> to vector<128xf32>
    %77 = vector.shape_cast %76 : vector<128xf32> to vector<128x1xf32>
    %cst_34 = arith.constant 3.200000e+01 : f32
    %78 = vector.broadcast %cst_34 : f32 to vector<128x1xf32>
    %79 = arith.divf %77, %78 : vector<128x1xf32>
    %80 = vector.broadcast %72 : vector<128x1xf32> to vector<128x32xf32>
    %81 = arith.subf %66, %80 : vector<128x32xf32>
    %cst_35 = arith.constant 9.99999974E-6 : f32
    %82 = vector.broadcast %cst_35 : f32 to vector<128x1xf32>
    %83 = arith.addf %79, %82 : vector<128x1xf32>
    %84 = math.rsqrt %83 : vector<128x1xf32>
    %85 = vector.broadcast %84 : vector<128x1xf32> to vector<128x32xf32>
    %86 = arith.mulf %81, %85 : vector<128x32xf32>
    %87 = vector.broadcast %67 : vector<1x32xf32> to vector<128x32xf32>
    %88 = arith.mulf %86, %87 : vector<128x32xf32>
    %89 = vector.broadcast %68 : vector<1x32xf32> to vector<128x32xf32>
    %90 = arith.addf %88, %89 : vector<128x32xf32>
    %c0_36 = arith.constant 0 : index
    %c0_37 = arith.constant 0 : index
    %91 = vector.load %arg21[%c0_36, %c0_37] : memref<32x32xbf16, #tpu.memory_space<vmem>>, vector<32x32xbf16>
    %92 = arith.truncf %90 : vector<128x32xf32> to vector<128x32xbf16>
    %cst_38 = arith.constant dense<0.000000e+00> : vector<128x32xf32>
    %93 = tpu.matmul %92, %91, %cst_38 {dimension_numbers = #tpu.dot_dimension_numbers<[1], [0], [0], [1], [0, 0, 1, 1], [], []>} : vector<128x32xbf16>, vector<32x32xbf16>, vector<128x32xf32> -> vector<128x32xf32>
    %c0_39 = arith.constant 0 : index
    %c0_40 = arith.constant 0 : index
    %94 = vector.load %arg22[%c0_39, %c0_40] : memref<1x32xf32, #tpu.memory_space<vmem>>, vector<1x32xf32>
    %95 = vector.broadcast %94 : vector<1x32xf32> to vector<128x32xf32>
    %96 = arith.addf %93, %95 : vector<128x32xf32>
    %97 = arith.negf %96 : vector<128x32xf32>
    %98 = math.exp %97 : vector<128x32xf32>
    %cst_41 = arith.constant 1.000000e+00 : f32
    %99 = vector.broadcast %cst_41 : f32 to vector<128x32xf32>
    %100 = arith.addf %99, %98 : vector<128x32xf32>
    %101 = arith.divf %99, %100 : vector<128x32xf32>
    %102 = arith.mulf %96, %101 : vector<128x32xf32>
    %c0_42 = arith.constant 0 : index
    %c0_43 = arith.constant 0 : index
    %103 = vector.load %arg23[%c0_42, %c0_43] : memref<1x32xf32, #tpu.memory_space<vmem>>, vector<1x32xf32>
    %104 = vector.broadcast %103 : vector<1x32xf32> to vector<128x32xf32>
    %105 = arith.mulf %102, %104 : vector<128x32xf32>
    %cst_44 = arith.constant dense<0.000000e+00> : vector<128xf32>
    %106 = vector.multi_reduction <add>, %105, %cst_44 [1] : vector<128x32xf32> to vector<128xf32>
    %107 = vector.shape_cast %106 : vector<128xf32> to vector<128x1xf32>
    %108 = vector.broadcast %107 : vector<128x1xf32> to vector<128x3xf32>
    %109 = arith.mulf %30, %108 : vector<128x3xf32>
    %cst_45 = arith.constant 1.000000e+00 : f32
    %110 = vector.broadcast %cst_45 : f32 to vector<128x1xf32>
    %111 = tpu.concatenate %90, %109, %110 in 1 : vector<128x32xf32>, vector<128x3xf32>, vector<128x1xf32> -> vector<128x36xf32>
    %112 = arith.truncf %111 : vector<128x36xf32> to vector<128x36xbf16>
    %c0_46 = arith.constant 0 : index
    %c0_47 = arith.constant 0 : index
    %113 = vector.load %arg26[%c0_46, %c0_47] : memref<16x36xf32, #tpu.memory_space<vmem>>, vector<16x36xf32>
    %cst_48 = arith.constant dense<0.000000e+00> : vector<16x36xf32>
    %114 = tpu.matmul %22, %112, %cst_48 {dimension_numbers = #tpu.dot_dimension_numbers<[1], [0], [0], [1], [0, 0, 1, 1], [], []>} : vector<16x128xbf16>, vector<128x36xbf16>, vector<16x36xf32> -> vector<16x36xf32>
    %115 = arith.addf %113, %114 : vector<16x36xf32>
    %c0_49 = arith.constant 0 : index
    %c0_50 = arith.constant 0 : index
    %116 = vector.load %arg26[%c0_49, %c0_50] : memref<16x36xf32, #tpu.memory_space<vmem>>, vector<16x36xf32>
    tpu.vector_store %arg26[%c0_49, %c0_50], %115 {strides = array<i32>} : memref<16x36xf32, #tpu.memory_space<vmem>>, vector<16x36xf32>,
    %c1_i32 = arith.constant 1 : i32
    %117 = arith.cmpi eq, %arg0, %c1_i32 : i32
    %118 = arith.extui %117 : i1 to i32
    %c0_i32_51 = arith.constant 0 : i32
    %119 = arith.cmpi ne, %118, %c0_i32_51 : i32
    scf.if %119 {
      %c0_52 = arith.constant 0 : index
      %c0_53 = arith.constant 0 : index
      %120 = vector.load %arg26[%c0_52, %c0_53] : memref<16x36xf32, #tpu.memory_space<vmem>>, vector<16x36xf32>
      %121 = vector.extract_strided_slice %120 {offsets = [0, 0], sizes = [16, 32], strides = [1, 1]} : vector<16x36xf32> to vector<16x32xf32>
      %122 = vector.extract_strided_slice %120 {offsets = [0, 32], sizes = [16, 3], strides = [1, 1]} : vector<16x36xf32> to vector<16x3xf32>
      %123 = vector.extract_strided_slice %120 {offsets = [0, 35], sizes = [16, 1], strides = [1, 1]} : vector<16x36xf32> to vector<16x1xf32>
      %c0_54 = arith.constant 0 : index
      %c0_55 = arith.constant 0 : index
      %124 = vector.load %arg5[%c0_54, %c0_55] : memref<16x3xf32, #tpu.memory_space<vmem>>, vector<16x3xf32>
      %cst_56 = arith.constant 1.000000e+00 : f32
      %125 = vector.broadcast %cst_56 : f32 to vector<16x1xf32>
      %126 = arith.maximumf %123, %125 : vector<16x1xf32>
      %127 = vector.broadcast %126 : vector<16x1xf32> to vector<16x3xf32>
      %128 = arith.divf %122, %127 : vector<16x3xf32>
      %129 = arith.addf %124, %128 : vector<16x3xf32>
      %c0_57 = arith.constant 0 : index
      %c0_58 = arith.constant 0 : index
      %130 = vector.load %arg25[%c0_57, %c0_58] : memref<16x35xbf16, #tpu.memory_space<vmem>>, vector<16x35xbf16>
      %131 = vector.extract_strided_slice %130 {offsets = [0, 0], sizes = [16, 32], strides = [1, 1]} : vector<16x35xbf16> to vector<16x32xbf16>
      %c0_59 = arith.constant 0 : index
      %c0_60 = arith.constant 0 : index
      %132 = vector.load %arg16[%c0_59, %c0_60] : memref<32x32xbf16, #tpu.memory_space<vmem>>, vector<32x32xbf16>
      %cst_61 = arith.constant dense<0.000000e+00> : vector<16x32xf32>
      %133 = tpu.matmul %131, %132, %cst_61 {dimension_numbers = #tpu.dot_dimension_numbers<[1], [0], [0], [1], [0, 0, 1, 1], [], []>} : vector<16x32xbf16>, vector<32x32xbf16>, vector<16x32xf32> -> vector<16x32xf32>
      %c0_62 = arith.constant 0 : index
      %c0_63 = arith.constant 0 : index
      %134 = vector.load %arg17[%c0_62, %c0_63] : memref<32x32xbf16, #tpu.memory_space<vmem>>, vector<32x32xbf16>
      %135 = arith.truncf %121 : vector<16x32xf32> to vector<16x32xbf16>
      %cst_64 = arith.constant dense<0.000000e+00> : vector<16x32xf32>
      %136 = tpu.matmul %135, %134, %cst_64 {dimension_numbers = #tpu.dot_dimension_numbers<[1], [0], [0], [1], [0, 0, 1, 1], [], []>} : vector<16x32xbf16>, vector<32x32xbf16>, vector<16x32xf32> -> vector<16x32xf32>
      %137 = arith.addf %133, %136 : vector<16x32xf32>
      %c0_65 = arith.constant 0 : index
      %c0_66 = arith.constant 0 : index
      %138 = vector.load %arg18[%c0_65, %c0_66] : memref<1x32xf32, #tpu.memory_space<vmem>>, vector<1x32xf32>
      %139 = vector.broadcast %138 : vector<1x32xf32> to vector<16x32xf32>
      %140 = arith.addf %137, %139 : vector<16x32xf32>
      %141 = arith.negf %140 : vector<16x32xf32>
      %142 = math.exp %141 : vector<16x32xf32>
      %cst_67 = arith.constant 1.000000e+00 : f32
      %143 = vector.broadcast %cst_67 : f32 to vector<16x32xf32>
      %144 = arith.addf %143, %142 : vector<16x32xf32>
      %145 = arith.divf %143, %144 : vector<16x32xf32>
      %146 = arith.mulf %140, %145 : vector<16x32xf32>
      %c0_68 = arith.constant 0 : index
      %c0_69 = arith.constant 0 : index
      %147 = vector.load %arg4[%c0_68, %c0_69] : memref<16x32xf32, #tpu.memory_space<vmem>>, vector<16x32xf32>
      %c0_70 = arith.constant 0 : index
      %c0_71 = arith.constant 0 : index
      %148 = vector.load %arg19[%c0_70, %c0_71] : memref<32x32xbf16, #tpu.memory_space<vmem>>, vector<32x32xbf16>
      %149 = arith.truncf %146 : vector<16x32xf32> to vector<16x32xbf16>
      %cst_72 = arith.constant dense<0.000000e+00> : vector<16x32xf32>
      %150 = tpu.matmul %149, %148, %cst_72 {dimension_numbers = #tpu.dot_dimension_numbers<[1], [0], [0], [1], [0, 0, 1, 1], [], []>} : vector<16x32xbf16>, vector<32x32xbf16>, vector<16x32xf32> -> vector<16x32xf32>
      %151 = arith.addf %147, %150 : vector<16x32xf32>
      %c0_73 = arith.constant 0 : index
      %c0_74 = arith.constant 0 : index
      %152 = vector.load %arg20[%c0_73, %c0_74] : memref<1x32xf32, #tpu.memory_space<vmem>>, vector<1x32xf32>
      %153 = vector.broadcast %152 : vector<1x32xf32> to vector<16x32xf32>
      %154 = arith.addf %151, %153 : vector<16x32xf32>
      %cst_75 = arith.constant 0.000000e+00 : f32
      %155 = vector.broadcast %cst_75 : f32 to vector<16x93xf32>
      %156 = tpu.concatenate %154, %129, %155 in 1 : vector<16x32xf32>, vector<16x3xf32>, vector<16x93xf32> -> vector<16x128xf32>
      %c0_76 = arith.constant 0 : index
      %c0_77 = arith.constant 0 : index
      %157 = vector.load %arg24[%c0_76, %c0_77] : memref<16x128xf32, #tpu.memory_space<vmem>>, vector<16x128xf32>
      tpu.vector_store %arg24[%c0_76, %c0_77], %156 {strides = array<i32>} : memref<16x128xf32, #tpu.memory_space<vmem>>, vector<16x128xf32>,
    } else {
    }
    return
  }
  func.func @transform_0(%arg0: i32) -> (i32, i32) {
    %c0_i32 = arith.constant 0 : i32
    %c0_i32_0 = arith.constant 0 : i32
    return %arg0, %c0_i32 : i32, i32
  }
  func.func @transform_1(%arg0: i32) -> (i32, i32) {
    %c0_i32 = arith.constant 0 : i32
    %c0_i32_0 = arith.constant 0 : i32
    return %arg0, %c0_i32 : i32, i32
  }
  func.func @transform_2(%arg0: i32) -> (i32, i32) {
    %c0_i32 = arith.constant 0 : i32
    %c0_i32_0 = arith.constant 0 : i32
    return %c0_i32, %arg0 : i32, i32
  }
  func.func @transform_3(%arg0: i32) -> (i32, i32) {
    %c0_i32 = arith.constant 0 : i32
    %c0_i32_0 = arith.constant 0 : i32
    %c0_i32_1 = arith.constant 0 : i32
    return %c0_i32, %c0_i32_0 : i32, i32
  }
  func.func @transform_4(%arg0: i32) -> (i32, i32) {
    %c0_i32 = arith.constant 0 : i32
    %c0_i32_0 = arith.constant 0 : i32
    %c0_i32_1 = arith.constant 0 : i32
    return %c0_i32, %c0_i32_0 : i32, i32
  }
  func.func @transform_5(%arg0: i32) -> (i32, i32) {
    %c0_i32 = arith.constant 0 : i32
    %c0_i32_0 = arith.constant 0 : i32
    %c0_i32_1 = arith.constant 0 : i32
    return %c0_i32, %c0_i32_0 : i32, i32
  }
  func.func @transform_6(%arg0: i32) -> (i32, i32) {
    %c0_i32 = arith.constant 0 : i32
    %c0_i32_0 = arith.constant 0 : i32
    %c0_i32_1 = arith.constant 0 : i32
    return %c0_i32, %c0_i32_0 : i32, i32
  }
  func.func @transform_7(%arg0: i32) -> (i32, i32) {
    %c0_i32 = arith.constant 0 : i32
    %c0_i32_0 = arith.constant 0 : i32
    %c0_i32_1 = arith.constant 0 : i32
    return %c0_i32, %c0_i32_0 : i32, i32
  }
  func.func @transform_8(%arg0: i32) -> (i32, i32) {
    %c0_i32 = arith.constant 0 : i32
    %c0_i32_0 = arith.constant 0 : i32
    %c0_i32_1 = arith.constant 0 : i32
    return %c0_i32, %c0_i32_0 : i32, i32
  }
  func.func @transform_9(%arg0: i32) -> (i32, i32) {
    %c0_i32 = arith.constant 0 : i32
    %c0_i32_0 = arith.constant 0 : i32
    %c0_i32_1 = arith.constant 0 : i32
    return %c0_i32, %c0_i32_0 : i32, i32
  }
  func.func @transform_10(%arg0: i32) -> (i32, i32) {
    %c0_i32 = arith.constant 0 : i32
    %c0_i32_0 = arith.constant 0 : i32
    %c0_i32_1 = arith.constant 0 : i32
    return %c0_i32, %c0_i32_0 : i32, i32
  }
  func.func @transform_11(%arg0: i32) -> (i32, i32) {
    %c0_i32 = arith.constant 0 : i32
    %c0_i32_0 = arith.constant 0 : i32
    %c0_i32_1 = arith.constant 0 : i32
    return %c0_i32, %c0_i32_0 : i32, i32
  }
  func.func @transform_12(%arg0: i32) -> (i32, i32) {
    %c0_i32 = arith.constant 0 : i32
    %c0_i32_0 = arith.constant 0 : i32
    %c0_i32_1 = arith.constant 0 : i32
    return %c0_i32, %c0_i32_0 : i32, i32
  }
  func.func @transform_13(%arg0: i32) -> (i32, i32) {
    %c0_i32 = arith.constant 0 : i32
    %c0_i32_0 = arith.constant 0 : i32
    %c0_i32_1 = arith.constant 0 : i32
    return %c0_i32, %c0_i32_0 : i32, i32
  }
  func.func @transform_14(%arg0: i32) -> (i32, i32) {
    %c0_i32 = arith.constant 0 : i32
    %c0_i32_0 = arith.constant 0 : i32
    %c0_i32_1 = arith.constant 0 : i32
    return %c0_i32, %c0_i32_0 : i32, i32
  }
  func.func @transform_15(%arg0: i32) -> (i32, i32) {
    %c0_i32 = arith.constant 0 : i32
    %c0_i32_0 = arith.constant 0 : i32
    %c0_i32_1 = arith.constant 0 : i32
    return %c0_i32, %c0_i32_0 : i32, i32
  }
  func.func @transform_16(%arg0: i32) -> (i32, i32) {
    %c0_i32 = arith.constant 0 : i32
    %c0_i32_0 = arith.constant 0 : i32
    %c0_i32_1 = arith.constant 0 : i32
    return %c0_i32, %c0_i32_0 : i32, i32
  }
  func.func @transform_17(%arg0: i32) -> (i32, i32) {
    %c0_i32 = arith.constant 0 : i32
    %c0_i32_0 = arith.constant 0 : i32
    %c0_i32_1 = arith.constant 0 : i32
    return %c0_i32, %c0_i32_0 : i32, i32
  }
  func.func @transform_18(%arg0: i32) -> (i32, i32) {
    %c0_i32 = arith.constant 0 : i32
    %c0_i32_0 = arith.constant 0 : i32
    %c0_i32_1 = arith.constant 0 : i32
    return %c0_i32, %c0_i32_0 : i32, i32
  }
  func.func @transform_19(%arg0: i32) -> (i32, i32) {
    %c0_i32 = arith.constant 0 : i32
    %c0_i32_0 = arith.constant 0 : i32
    %c0_i32_1 = arith.constant 0 : i32
    return %c0_i32, %c0_i32_0 : i32, i32
  }
  func.func @transform_20(%arg0: i32) -> (i32, i32) {
    %c0_i32 = arith.constant 0 : i32
    %c0_i32_0 = arith.constant 0 : i32
    %c0_i32_1 = arith.constant 0 : i32
    return %c0_i32, %c0_i32_0 : i32, i32
  }
  func.func @transform_21(%arg0: i32) -> (i32, i32) {
    %c0_i32 = arith.constant 0 : i32
    %c0_i32_0 = arith.constant 0 : i32
    %c0_i32_1 = arith.constant 0 : i32
    return %c0_i32, %c0_i32_0 : i32, i32
  }
  func.func @transform_22(%arg0: i32) -> (i32, i32) {
    %c0_i32 = arith.constant 0 : i32
    %c0_i32_0 = arith.constant 0 : i32
    %c0_i32_1 = arith.constant 0 : i32
    return %c0_i32, %c0_i32_0 : i32, i32
  }
  func.func @transform_23(%arg0: i32) -> (i32, i32) {
    %c0_i32 = arith.constant 0 : i32
    %c0_i32_0 = arith.constant 0 : i32
    %c0_i32_1 = arith.constant 0 : i32
    return %c0_i32, %c0_i32_0 : i32, i32
  }
}

</mosaic_0001>

<bundles_post_ra>
// kernel: tpu_custom_call.1
= control target key start
LH: loop header
LB: loop body
LE: loop exit
PB: predicated region body
PF: predicated region fallthrough
CT: control target
= control target key end

     0   :  { %s5198_s0 = inlined_call_operand.vmem [shape: s32[256,1], index: 0, kind: input, shape index: {}]   ;;  %s5199_s1 = inlined_call_operand.vmem [shape: s32[256,1], index: 1, kind: input, shape index: {}]   ;;  %s5200_s2 = inlined_call_operand.vmem [shape: s32[1,256], index: 2, kind: input, shape index: {}]   ;;  %s5201_s3 = inlined_call_operand.vmem [shape: f32[16,32], index: 3, kind: input, shape index: {}]   ;;  %s5202_s4 = inlined_call_operand.vmem [shape: f32[16,3], index: 4, kind: input, shape index: {}]   ;;  %s5203_s5 = inlined_call_operand.vmem [shape: f32[1,32], index: 5, kind: input, shape index: {}]   ;;  %s5204_s6 = inlined_call_operand.vmem [shape: f32[1,32], index: 6, kind: input, shape index: {}]   ;;  %s5205_s7 = inlined_call_operand.vmem [shape: f32[1,32], index: 7, kind: input, shape index: {}]   ;;  %s5206_s8 = inlined_call_operand.vmem [shape: f32[1,32], index: 8, kind: input, shape index: {}]   ;;  %s5207_s9 = inlined_call_operand.vmem [shape: bf16[32,32], index: 9, kind: input, shape index: {}]   ;;  %s5208_s10 = inlined_call_operand.vmem [shape: bf16[32,32], index: 10, kind: input, shape index: {}]   ;;  %s5209_s11 = inlined_call_operand.vmem [shape: f32[1,32], index: 11, kind: input, shape index: {}]   ;;  %s5210_s12 = inlined_call_operand.vmem [shape: f32[1,32], index: 12, kind: input, shape index: {}]   ;;  %s5211_s13 = inlined_call_operand.vmem [shape: bf16[32,32], index: 13, kind: input, shape index: {}]   ;;  %s5212_s14 = inlined_call_operand.vmem [shape: f32[1,32], index: 14, kind: input, shape index: {}]   ;;  %s5213_s15 = inlined_call_operand.vmem [shape: bf16[32,32], index: 15, kind: input, shape index: {}]   ;;  %s5214_s16 = inlined_call_operand.vmem [shape: bf16[32,32], index: 16, kind: input, shape index: {}]   ;;  %s5215_s17 = inlined_call_operand.vmem [shape: f32[1,32], index: 17, kind: input, shape index: {}]   ;;  %s5216_s18 = inlined_call_operand.vmem [shape: bf16[32,32], index: 18, kind: input, shape index: {}]   ;;  %s5217_s19 = inlined_call_operand.vmem [shape: f32[1,32], index: 19, kind: input, shape index: {}]   ;;  %s5218_s20 = inlined_call_operand.vmem [shape: bf16[32,32], index: 20, kind: input, shape index: {}]   ;;  %s5219_s21 = inlined_call_operand.vmem [shape: f32[1,32], index: 21, kind: input, shape index: {}]   ;;  %s5220_s22 = inlined_call_operand.vmem [shape: f32[1,32], index: 22, kind: input, shape index: {}]   ;;  %s5221_s23 = inlined_call_operand.hbm [shape: f32[16,128], index: 23, kind: output, shape index: {}]  }
   0x1   :  { %5232 = sst [smem:[#allocation8_spill]] %s5198_s0 }
   0x2   :  { %5233 = sst [smem:[#allocation9_spill]] %s5199_s1 }
   0x3   :  { %5234 = sst [smem:[#allocation10_spill]] %s5200_s2 }
   0x4   :  { %5235 = sst [smem:[#allocation11_spill]] %s5201_s3 }
   0x5   :  { %5236 = sst [smem:[#allocation12_spill]] %s5202_s4 }
   0x6   :  { %5237 = sst [smem:[#allocation13_spill]] %s5203_s5 }
   0x7   :  { %5238 = sst [smem:[#allocation14_spill]] %s5204_s6 }
   0x8   :  { %5239 = sst [smem:[#allocation15_spill]] %s5205_s7 }
   0x9   :  { %5240 = sst [smem:[#allocation16_spill]] %s5215_s17 }
   0xa   :  { %5241 = sst [smem:[#allocation17_spill]] %s5216_s18 }
   0xb   :  { %5242 = sst [smem:[#allocation18_spill]] %s5217_s19 }
   0xc   :  { %5243 = sst [smem:[#allocation19_spill]] %s5221_s23 }
   0xd   :  { %28 = vsyncpa [#allocation5], 0  ;;  %s4105_s4 = smov 0  }
   0xe LB: > { %5244 = sst [smem:[#allocation7_spill]] %s3968_s4  ;;  %s4111_s30 = sadd.s32 4294967295, %s3968_s4   ;;  %s3968_s4 = sphi %s4105_s4, %s34_s4  }
   0xf   : > { %p3215_p0 = scmp.ge.s32.totalorder %s3968_s4, 1  ;;  %p653_p1 = scmp.lt.s32.totalorder %s3968_s4, 3 }
  0x11   : > { %p654_p2 = pnand %p3215_p0, %p653_p1 }
  0x12   : > { %s3216_s24 = sshll.u32 (!%p654_p2), %s4111_s30, 4  ;;  %p732_p3 = scmp.lt.s32.totalorder (!%p654_p2), %s4111_s30, 1 }
  0x13   : > { %657 = sbr.rel (%p654_p2) target bundleno = 2772 (0xad4), region = 112  ;;  %p721_p4 = scmp.lt.s32.totalorder (!%p654_p2), %s3216_s24, 31 }
  0x14   : > { %s5245_s26 = sld [smem:[#allocation10_spill]] (!%p654_p2)  ;;  %s5246_s28 = sld [smem:[#allocation8_spill]] (!%p654_p2) }
  0x15   : > { %s5247_s4 = sld [smem:[#allocation9_spill]] (!%p654_p2)  ;;  %p3220_p5 = scmp.ne.s32.totalorder (!%p654_p2), %s4111_s30, 0 }
  0x1a   : > { %s4118_s25 = scalar_select %p732_p3, %s4111_s30, 1 }
  0x1b   : > { %s5264_s24 = smov (!%p721_p4, %s3216_s24), 31  ;;  %739 = sbr.rel (%p3220_p5) target bundleno = 358 (0x166), region = 116 }
  0x1c   : > { %s734_s2 = scalar_lea.vmem %s5245_s26, %s4118_s25  ;;  %s3217_s6 = sshll.u32 %s5264_s24, 3  ;;  %vm744_vm0 = vcmask (!%p3220_p5), 261120   ;;  %vm803_vm1 = vcmask (!%p3220_p5), 293888   ;;  %v3971_v17 = vmov (!%p3220_p5), 0.0   ;;  %vm801_vm2 = vcmask (!%p3220_p5), 285696  }
  0x1d   : > { %s4127_s29 = scalar_lea.vmem %s5246_s28, %s3217_s6  ;;  %s4132_s23 = scalar_lea.vmem %s5247_s4, %s3217_s6  ;;  %804 = vst.msk [vmem:[#allocation3] sm:$0xff] (!%p3220_p5), %vm803_vm1, %v3971_v17  ;;  %805 = vst.msk [vmem:[#allocation3 + $0x8] sm:$0xff] (!%p3220_p5), %vm803_vm1, %v3971_v17 }
  0x1e   : > { %s5248_s18 = sld [smem:[#allocation11_spill]] (!%p3220_p5)  ;;  %s5249_s26 = sld [smem:[#allocation12_spill]] (!%p3220_p5) }
  0x1f   : > { %s3970_s17 = smov (!%p3220_p5), 32   ;;  %s5250_s7 = sld [smem:[#allocation13_spill]] (!%p3220_p5) }
  0x20   : > { %s5251_s0 = sld [smem:[#allocation14_spill]] (!%p3220_p5) }
  0x24   : > { %v740_v0 = vld [vmem:[%s5248_s18] sm:$0xff]  ;;  %v741_v1 = vld [vmem:[%s5248_s18 + $0x8] sm:$0xff] }
  0x25   : > { %v745_v2 = vsel %vm744_vm0, %v740_v0, 0.0  ;;  %v748_v3 = vsel %vm744_vm0, %v741_v1, 0.0  ;;  %v788_v4 = vld [vmem:[%s5249_s26] sm:$0xff]  ;;  %v789_v5 = vld [vmem:[%s5249_s26 + $0x8] sm:$0xff] }
  0x26   : > { %746 = vadd.xlane.f32.xlu0 %v745_v2  ;;  %v3670_v6 = vpack.i.bf16 %v789_v5, %v788_v4  ;;  %v3221_v25 = vld [vmem:[%s5250_s7] ss:$0 sm:$0xff] }
  0x27   : > { %v3222_v29 = vld [vmem:[%s5251_s0] ss:$0 sm:$0xff] }
  0x2a   : > { %749 = vadd.xlane.f32.xlu0 %v748_v3 }
  0x40   : > { %3671 = vrot.lane.b32.xlu0 %v3670_v6, %s3970_s17 }
  0xb3   : > { %v747_v7 = vpop.xlane.xlu0 %746 }
  0xb4   : > { %v752_v8 = vmul.f32 0.03125, %v747_v7 }
  0xb6   : > { %v754_v9 = vsub.f32 %v740_v0, %v752_v8 }
  0xb7   : > { %v750_v10 = vpop.xlane.xlu0 %749 }
  0xb8   : > { %v753_v11 = vmul.f32 0.03125, %v750_v10  ;;  %v756_v12 = vmul.f32 %v754_v9, %v754_v9 }
  0xba   : > { %v755_v13 = vsub.f32 %v741_v1, %v753_v11  ;;  %v758_v14 = vsel %vm744_vm0, %v756_v12, 0.0 }
  0xbb   : > { %759 = vadd.xlane.f32.xlu1 %v758_v14  ;;  %v3672_v30 = vpop.permute.xlu0 %3671 }
  0xbc   : > { %v757_v15 = vmul.f32 %v755_v13, %v755_v13  ;;  %v3674_v34 = vunpack.i.h.bf16 %v3672_v30  ;;  %v3673_v35 = vunpack.i.l.bf16 %v3672_v30 }
  0xbe   : > { %v761_v16 = vsel %vm744_vm0, %v757_v15, 0.0 }
  0xbf   : > { %762 = vadd.xlane.f32.xlu1 %v761_v16 }
 0x148   : > { %v760_v18 = vpop.xlane.xlu1 %759 }
 0x149   : > { %v764_v19 = vmul.f32 0.03125, %v760_v18 }
 0x14b   : > { %v766_v20 = vadd.f32 1e-05, %v764_v19 }
 0x14c   : > { %v763_v21 = vpop.xlane.xlu1 %762 }
 0x14d   : > { %3675 = vrsqrt.f32 %v766_v20  ;;  %v765_v22 = vmul.f32 0.03125, %v763_v21 }
 0x14f   : > { %v767_v23 = vadd.f32 1e-05, %v765_v22 }
 0x151   : > { %3677 = vrsqrt.f32 %v767_v23 }
 0x157   : > { %v3676_v24 = vpop.eup %3675 }
 0x158   : > { %v770_v26 = vmul.f32 %v3676_v24, %v754_v9 }
 0x15a   : > { %v778_v27 = vmul.f32 %v3221_v25, %v770_v26 }
 0x15b   : > { %v3678_v28 = vpop.eup %3677 }
 0x15c   : > { %v771_v31 = vmul.f32 %v3678_v28, %v755_v13  ;;  %v786_v33 = vadd.f32 %v3222_v29, %v778_v27 }
 0x15e   : > { %v779_v32 = vmul.f32 %v3221_v25, %v771_v31  ;;  %v798_v38 = vsel %vm744_vm0, %v786_v33, %v3673_v35 }
 0x160   : > { %v787_v36 = vadd.f32 %v3222_v29, %v779_v32 }
 0x162   : > { %v799_v37 = vsel %vm744_vm0, %v787_v36, %v3674_v34 }
 0x163   : > { %v800_v39 = vpack.c.bf16 %v799_v37, %v798_v38 }
 0x165   : > { %802 = vst.msk [vmem:[#allocation2] sm:$0xff] %vm801_vm2, %v800_v39 }
 0x166 PF: > { %v824_v40 = vld [vmem:[%s4132_s23 + $0x10] sm:$0xff]  ;;  %v822_v41 = vld [vmem:[%s4132_s23] sm:$0xff]  ;;  %v3972_v42 = vmov 0   ;;  %v825_v43 = vld [vmem:[%s4132_s23 + $0x18] sm:$0xff]  ;;  %v5229_v11 = vlaneseq  ;;  %vm1064_vm7 = vcmask 130048   ;;  %v5230_v17 = vmov 0.0  }
 0x167   : > { %3680 = vset.pattern.permute.xlu1 %v3972_v42  ;;  %3679 = vset.pattern.permute.xlu0 %v3972_v42  ;;  %v823_v44 = vld [vmem:[%s4132_s23 + $0x8] sm:$0xff]  ;;  %v826_v46 = vld [vmem:[%s4132_s23 + $0x20] sm:$0xff]  ;;  %v829_v47 = vld [vmem:[%s4132_s23 + $0x38] sm:$0xff]  ;;  %s3974_s27 = smov 96   ;;  %s5252_s17 = sld [smem:[#allocation15_spill]] }
 0x168   : > { %955 = vperm.xlu1 %3680, %v824_v40   ;;  %949 = vperm.xlu0 %3679, %v822_v41   ;;  %v827_v45 = vld [vmem:[%s4132_s23 + $0x28] sm:$0xff]  ;;  %v828_v48 = vld [vmem:[%s4132_s23 + $0x30] sm:$0xff]  ;;  %v830_v51 = vld [vmem:[%s4132_s23 + $0x40] sm:$0xff]  ;;  %v4198_v12 = vand.u32 127, %v5229_v11  ;;  %p3371_p6 = scmp.ne.s32.totalorder %s4111_s30, 1 }
 0x169   : > { %v831_v50 = vld [vmem:[%s4132_s23 + $0x48] sm:$0xff]  ;;  %v833_v52 = vld [vmem:[%s4132_s23 + $0x58] sm:$0xff]  ;;  %v832_v53 = vld [vmem:[%s4132_s23 + $0x50] sm:$0xff]  ;;  %s5256_s19 = sld [smem:[#allocation17_spill]] (!%p3371_p6)  ;;  %s3980_s3 = smov (!%p3371_p6), 96  }
 0x16a   : > { %v835_v54 = vld [vmem:[%s4132_s23 + $0x68] sm:$0xff]  ;;  %v834_v55 = vld [vmem:[%s4132_s23 + $0x60] sm:$0xff]  ;;  %v837_v56 = vld [vmem:[%s4132_s23 + $0x78] sm:$0xff]  ;;  %s5257_s5 = sld [smem:[#allocation16_spill]] (!%p3371_p6)  ;;  %s3981_s1 = smov (!%p3371_p6), 32  }
 0x16b   : > { %v836_v57 = vld [vmem:[%s4132_s23 + $0x70] sm:$0xff]  ;;  %v807_v58 = vld [vmem:[%s4127_s29 + $0x8] sm:$0xff]  ;;  %v806_v59 = vld [vmem:[%s4127_s29] sm:$0xff] }
 0x16c   : > { %958 = vperm.xlu1 %3680, %v825_v43   ;;  %952 = vperm.xlu0 %3679, %v823_v44   ;;  %v1063_v49 = vld [vmem:[#allocation2] sm:$0xff]  ;;  %v809_v60 = vld [vmem:[%s4127_s29 + $0x18] sm:$0xff]  ;;  %v808_v61 = vld [vmem:[%s4127_s29 + $0x10] sm:$0xff] }
 0x16d   : > { %3483 = vmatprep.subr.bf16.mxu1 %v1063_v49  ;;  %3465 = vmatprep.subr.bf16.mxu0 %v1063_v49  ;;  %v811_v62 = vld [vmem:[%s4127_s29 + $0x28] sm:$0xff]  ;;  %v810_v63 = vld [vmem:[%s4127_s29 + $0x20] sm:$0xff]  ;;  %v813_v0 = vld [vmem:[%s4127_s29 + $0x38] sm:$0xff] }
 0x16e   : > { %3484 = vmatpush3.bf16.msra.mxu1 %v1063_v49  ;;  %3466 = vmatpush3.bf16.msra.mxu0 %v1063_v49  ;;  %v812_v1 = vld [vmem:[%s4127_s29 + $0x30] sm:$0xff]  ;;  %v815_v2 = vld [vmem:[%s4127_s29 + $0x48] sm:$0xff]  ;;  %v814_v3 = vld [vmem:[%s4127_s29 + $0x40] sm:$0xff] }
 0x16f   : > { %v817_v4 = vld [vmem:[%s4127_s29 + $0x58] sm:$0xff]  ;;  %v816_v5 = vld [vmem:[%s4127_s29 + $0x50] sm:$0xff]  ;;  %v819_v6 = vld [vmem:[%s4127_s29 + $0x68] sm:$0xff] }
 0x170   : > { %964 = vperm.xlu1 %3680, %v827_v45   ;;  %961 = vperm.xlu0 %3679, %v826_v46   ;;  %v818_v7 = vld [vmem:[%s4127_s29 + $0x60] sm:$0xff]  ;;  %v821_v8 = vld [vmem:[%s4127_s29 + $0x78] sm:$0xff]  ;;  %v820_v9 = vld [vmem:[%s4127_s29 + $0x70] sm:$0xff] }
 0x171   : > { %v4194_v10 = vld [vmem:[%s5208_s10] sm:$0xff]  }
 0x172   : > { %3501 = vmatprep.subr.bf16.mxu0 %v4194_v10 }
 0x174   : > { %970 = vperm.xlu1 %3680, %v829_v47   ;;  %967 = vperm.xlu0 %3679, %v828_v48  }
 0x178   : > { %976 = vperm.xlu1 %3680, %v831_v50   ;;  %973 = vperm.xlu0 %3679, %v830_v51  }
 0x17c   : > { %982 = vperm.xlu1 %3680, %v833_v52   ;;  %979 = vperm.xlu0 %3679, %v832_v53  }
 0x180   : > { %988 = vperm.xlu1 %3680, %v835_v54   ;;  %985 = vperm.xlu0 %3679, %v834_v55  }
 0x184   : > { %994 = vperm.xlu1 %3680, %v837_v56   ;;  %991 = vperm.xlu0 %3679, %v836_v57  }
 0x188   : > { %848 = vperm.xlu1 %3680, %v807_v58   ;;  %845 = vperm.xlu0 %3679, %v806_v59  }
 0x18c   : > { %854 = vperm.xlu1 %3680, %v809_v60   ;;  %851 = vperm.xlu0 %3679, %v808_v61  }
 0x190   : > { %860 = vperm.xlu1 %3680, %v811_v62   ;;  %857 = vperm.xlu0 %3679, %v810_v63  }
 0x194   : > { %866 = vperm.xlu1 %3680, %v813_v0   ;;  %863 = vperm.xlu0 %3679, %v812_v1  }
 0x198   : > { %872 = vperm.xlu1 %3680, %v815_v2   ;;  %869 = vperm.xlu0 %3679, %v814_v3  }
 0x19c   : > { %878 = vperm.xlu1 %3680, %v817_v4   ;;  %875 = vperm.xlu0 %3679, %v816_v5  }
 0x1a0   : > { %884 = vperm.xlu1 %3680, %v819_v6   ;;  %881 = vperm.xlu0 %3679, %v818_v7  }
 0x1a4   : > { %890 = vperm.xlu1 %3680, %v821_v8   ;;  %887 = vperm.xlu0 %3679, %v820_v9  }
 0x1e7   : > { %v956_v13 = vpop.permute.xlu1 %955  ;;  %v950_v14 = vpop.permute.xlu0 %949 }
 0x1e8   : > { %vm998_vm3 = vcmp.eq.s32.totalorder %v4198_v12, %v956_v13  ;;  %vm996_vm4 = vcmp.eq.s32.totalorder %v4198_v12, %v950_v14 }
 0x1e9   : > { %v3241_v18 = vsel %vm998_vm3, 1.0, %v5230_v17  ;;  %v3239_v20 = vsel %vm996_vm4, 1.0, %v5230_v17 }
 0x1eb   : > { %v959_v15 = vpop.permute.xlu1 %958  ;;  %v953_v16 = vpop.permute.xlu0 %952 }
 0x1ec   : > { %vm999_vm5 = vcmp.eq.s32.totalorder %v4198_v12, %v959_v15  ;;  %vm997_vm6 = vcmp.eq.s32.totalorder %v4198_v12, %v953_v16 }
 0x1ed   : > { %v3242_v19 = vsel %vm999_vm5, 1.0, %v5230_v17  ;;  %v3240_v21 = vsel %vm997_vm6, 1.0, %v5230_v17 }
 0x1ee   : > { %v1045_v22 = vpack.c.bf16 %v3242_v19, %v3241_v18  ;;  %v1044_v23 = vpack.c.bf16 %v3240_v21, %v3239_v20 }
 0x1ef   : > { %v965_v24 = vpop.permute.xlu1 %964  ;;  %v962_v25 = vpop.permute.xlu0 %961 }
 0x1f0   : > { %vm1001_vm8 = vcmp.eq.s32.totalorder %v4198_v12, %v965_v24  ;;  %vm1000_vm9 = vcmp.eq.s32.totalorder %v4198_v12, %v962_v25  ;;  %3485 = vmatprep.mubr.msk.bf16.mxu1 %vm1064_vm7, %v1044_v23 }
 0x1f1   : > { %v3244_v26 = vsel %vm1001_vm8, 1.0, %v5230_v17  ;;  %v3243_v27 = vsel %vm1000_vm9, 1.0, %v5230_v17  ;;  %3486 = vmatmul.mubr.msk.bf16.vlgmr.msra.gmra.mrb[0].mxu1 %vm1064_vm7, %v1045_v22 }
 0x1f2   : > { %v1046_v28 = vpack.c.bf16 %v3244_v26, %v3243_v27 }
 0x1f3   : > { %v971_v29 = vpop.permute.xlu1 %970  ;;  %v968_v30 = vpop.permute.xlu0 %967 }
 0x1f4   : > { %vm1003_vm10 = vcmp.eq.s32.totalorder %v4198_v12, %v971_v29  ;;  %vm1002_vm11 = vcmp.eq.s32.totalorder %v4198_v12, %v968_v30  ;;  %3489 = vmatprep.mubr.msk.bf16.mxu1 %vm1064_vm7, %v1046_v28 }
 0x1f5   : > { %v3246_v31 = vsel %vm1003_vm10, 1.0, %v5230_v17  ;;  %v3245_v32 = vsel %vm1002_vm11, 1.0, %v5230_v17 }
 0x1f6   : > { %v1047_v33 = vpack.c.bf16 %v3246_v31, %v3245_v32 }
 0x1f7   : > { %v977_v34 = vpop.permute.xlu1 %976  ;;  %v974_v35 = vpop.permute.xlu0 %973 }
 0x1f8   : > { %vm1005_vm12 = vcmp.eq.s32.totalorder %v4198_v12, %v977_v34  ;;  %vm1004_vm13 = vcmp.eq.s32.totalorder %v4198_v12, %v974_v35  ;;  %v3683_v34 = vld [vmem:[%s5207_s9] sm:$0xff]  }
 0x1f9   : > { %v3248_v36 = vsel %vm1005_vm12, 1.0, %v5230_v17  ;;  %v3247_v37 = vsel %vm1004_vm13, 1.0, %v5230_v17  ;;  %3490 = vmatmul.mubr.msk.bf16.gmra.mrb[4].mxu1 %vm1064_vm7, %v1047_v33  ;;  %v3682_v33 = vld [vmem:[%s5208_s10 + $0x8] sm:$0xff]  }
 0x1fa   : > { %v1048_v38 = vpack.c.bf16 %v3248_v36, %v3247_v37 }
 0x1fb   : > { %v983_v39 = vpop.permute.xlu1 %982  ;;  %v980_v40 = vpop.permute.xlu0 %979 }
 0x1fc   : > { %vm1007_vm14 = vcmp.eq.s32.totalorder %v4198_v12, %v983_v39  ;;  %vm1006_vm15 = vcmp.eq.s32.totalorder %v4198_v12, %v980_v40  ;;  %3493 = vmatprep.mubr.msk.bf16.mxu1 %vm1064_vm7, %v1048_v38  ;;  %v3684_v40 = vld [vmem:[%s5207_s9 + $0x8] sm:$0xff]  }
 0x1fd   : > { %v3250_v41 = vsel %vm1007_vm14, 1.0, %v5230_v17  ;;  %v3249_v42 = vsel %vm1006_vm15, 1.0, %v5230_v17 }
 0x1fe   : > { %v1049_v43 = vpack.c.bf16 %v3250_v41, %v3249_v42 }
 0x1ff   : > { %v989_v44 = vpop.permute.xlu1 %988  ;;  %v986_v45 = vpop.permute.xlu0 %985 }
 0x200   : > { %vm1009_vm0 = vcmp.eq.s32.totalorder %v4198_v12, %v989_v44  ;;  %vm1008_vm1 = vcmp.eq.s32.totalorder %v4198_v12, %v986_v45 }
 0x201   : > { %v3252_v46 = vsel %vm1009_vm0, 1.0, %v5230_v17  ;;  %v3251_v47 = vsel %vm1008_vm1, 1.0, %v5230_v17  ;;  %3494 = vmatmul.mubr.msk.bf16.gmra.mrb[8].mxu1 %vm1064_vm7, %v1049_v43 }
 0x202   : > { %v1050_v48 = vpack.c.bf16 %v3252_v46, %v3251_v47 }
 0x203   : > { %v995_v49 = vpop.permute.xlu1 %994  ;;  %v992_v50 = vpop.permute.xlu0 %991 }
 0x204   : > { %vm1011_vm2 = vcmp.eq.s32.totalorder %v4198_v12, %v995_v49  ;;  %vm1010_vm3 = vcmp.eq.s32.totalorder %v4198_v12, %v992_v50  ;;  %3497 = vmatprep.mubr.msk.bf16.mxu1 %vm1064_vm7, %v1050_v48 }
 0x205   : > { %v3254_v51 = vsel %vm1011_vm2, 1.0, %v5230_v17  ;;  %v3253_v52 = vsel %vm1010_vm3, 1.0, %v5230_v17 }
 0x206   : > { %v1051_v53 = vpack.c.bf16 %v3254_v51, %v3253_v52 }
 0x207   : > { %v849_v54 = vpop.permute.xlu1 %848  ;;  %v846_v55 = vpop.permute.xlu0 %845 }
 0x208   : > { %vm893_vm4 = vcmp.eq.s32.totalorder %v4198_v12, %v849_v54  ;;  %vm892_vm5 = vcmp.eq.s32.totalorder %v4198_v12, %v846_v55 }
 0x209   : > { %v3224_v56 = vsel %vm893_vm4, 1.0, %v5230_v17  ;;  %v3223_v57 = vsel %vm892_vm5, 1.0, %v5230_v17  ;;  %3498 = vmatmul.mubr.msk.bf16.gmra.mrb[12].mxu1 %vm1064_vm7, %v1051_v53  ;;  %vm1488_vm5 = vcmask 261120  }
 0x20a   : > { %v940_v58 = vpack.c.bf16 %v3224_v56, %v3223_v57 }
 0x20b   : > { %v855_v59 = vpop.permute.xlu1 %854  ;;  %v852_v60 = vpop.permute.xlu0 %851 }
 0x20c   : > { %vm895_vm6 = vcmp.eq.s32.totalorder %v4198_v12, %v855_v59  ;;  %vm894_vm8 = vcmp.eq.s32.totalorder %v4198_v12, %v852_v60  ;;  %3467 = vmatprep.mubr.msk.bf16.mxu0 %vm1064_vm7, %v940_v58 }
 0x20d   : > { %v3226_v61 = vsel %vm895_vm6, 1.0, %v5230_v17  ;;  %v3225_v62 = vsel %vm894_vm8, 1.0, %v5230_v17  ;;  %vm3975_vm6 = vmmov 0   ;;  %vm2803_vm8 = vcmask 285696  }
 0x20e   : > { %v941_v63 = vpack.c.bf16 %v3226_v61, %v3225_v62 }
 0x20f   : > { %v861_v0 = vpop.permute.xlu1 %860  ;;  %v858_v1 = vpop.permute.xlu0 %857 }
 0x210   : > { %vm897_vm9 = vcmp.eq.s32.totalorder %v4198_v12, %v861_v0  ;;  %vm896_vm10 = vcmp.eq.s32.totalorder %v4198_v12, %v858_v1  ;;  %3468 = vmatmul.mubr.msk.bf16.vlgmr.msra.gmra.mrb[0].mxu0 %vm1064_vm7, %v941_v63 }
 0x211   : > { %v3228_v2 = vsel %vm897_vm9, 1.0, %v5230_v17  ;;  %v3227_v3 = vsel %vm896_vm10, 1.0, %v5230_v17  ;;  %3502 = vmatpush3.bf16.msra.mxu0 %v4194_v10 }
 0x212   : > { %v942_v4 = vpack.c.bf16 %v3228_v2, %v3227_v3  ;;  %3503 = vmatprep.subr.bf16.mxu0 %v3682_v33 }
 0x213   : > { %v867_v5 = vpop.permute.xlu1 %866  ;;  %v864_v6 = vpop.permute.xlu0 %863 }
 0x214   : > { %vm899_vm11 = vcmp.eq.s32.totalorder %v4198_v12, %v867_v5  ;;  %vm898_vm12 = vcmp.eq.s32.totalorder %v4198_v12, %v864_v6  ;;  %3471 = vmatprep.mubr.msk.bf16.mxu0 %vm1064_vm7, %v942_v4 }
 0x215   : > { %v3230_v7 = vsel %vm899_vm11, 1.0, %v5230_v17  ;;  %v3229_v8 = vsel %vm898_vm12, 1.0, %v5230_v17  ;;  %3504 = vmatpush3.bf16.msra.mxu0 %v3682_v33  ;;  %vm2873_vm12 = vcmask 293888  }
 0x216   : > { %v943_v9 = vpack.c.bf16 %v3230_v7, %v3229_v8  ;;  %3521 = vmatprep.subr.bf16.mxu0 %v3683_v34 }
 0x217   : > { %v873_v13 = vpop.permute.xlu1 %872  ;;  %v870_v14 = vpop.permute.xlu0 %869 }
 0x218   : > { %vm901_vm13 = vcmp.eq.s32.totalorder %v4198_v12, %v873_v13  ;;  %vm900_vm14 = vcmp.eq.s32.totalorder %v4198_v12, %v870_v14  ;;  %3472 = vmatmul.mubr.msk.bf16.gmra.mrb[4].mxu0 %vm1064_vm7, %v943_v9 }
 0x219   : > { %v3232_v10 = vsel %vm901_vm13, 1.0, %v5230_v17  ;;  %v3231_v15 = vsel %vm900_vm14, 1.0, %v5230_v17  ;;  %vm3978_vm13 = vmmov (!%p3371_p6), 0  }
 0x21a   : > { %v944_v16 = vpack.c.bf16 %v3232_v10, %v3231_v15 }
 0x21b   : > { %v879_v18 = vpop.permute.xlu1 %878  ;;  %v876_v19 = vpop.permute.xlu0 %875 }
 0x21c   : > { %vm903_vm15 = vcmp.eq.s32.totalorder %v4198_v12, %v879_v18  ;;  %vm902_vm0 = vcmp.eq.s32.totalorder %v4198_v12, %v876_v19  ;;  %3475 = vmatprep.mubr.msk.bf16.mxu0 %vm1064_vm7, %v944_v16 }
 0x21d   : > { %v3234_v20 = vsel %vm903_vm15, 1.0, %v5230_v17  ;;  %v3233_v21 = vsel %vm902_vm0, 1.0, %v5230_v17 }
 0x21e   : > { %v945_v22 = vpack.c.bf16 %v3234_v20, %v3233_v21 }
 0x21f   : > { %v885_v23 = vpop.permute.xlu1 %884  ;;  %v882_v24 = vpop.permute.xlu0 %881 }
 0x220   : > { %vm905_vm1 = vcmp.eq.s32.totalorder %v4198_v12, %v885_v23  ;;  %vm904_vm2 = vcmp.eq.s32.totalorder %v4198_v12, %v882_v24  ;;  %3476 = vmatmul.mubr.msk.bf16.gmra.mrb[8].mxu0 %vm1064_vm7, %v945_v22 }
 0x221   : > { %v3236_v25 = vsel %vm905_vm1, 1.0, %v5230_v17  ;;  %v3235_v26 = vsel %vm904_vm2, 1.0, %v5230_v17 }
 0x222   : > { %v946_v27 = vpack.c.bf16 %v3236_v25, %v3235_v26 }
 0x223   : > { %v891_v28 = vpop.permute.xlu1 %890  ;;  %v888_v29 = vpop.permute.xlu0 %887 }
 0x224   : > { %vm907_vm3 = vcmp.eq.s32.totalorder %v4198_v12, %v891_v28  ;;  %vm906_vm4 = vcmp.eq.s32.totalorder %v4198_v12, %v888_v29  ;;  %3479 = vmatprep.mubr.msk.bf16.mxu0 %vm1064_vm7, %v946_v27 }
 0x225   : > { %v3238_v30 = vsel %vm907_vm3, 1.0, %v5230_v17  ;;  %v3237_v31 = vsel %vm906_vm4, 1.0, %v5230_v17 }
 0x226   : > { %v947_v32 = vpack.c.bf16 %v3238_v30, %v3237_v31 }
 0x228   : > { %3480 = vmatmul.mubr.msk.bf16.gmra.mrb[12].mxu0 %vm1064_vm7, %v947_v32  ;;  %vm1403_vm7 = vcmask 23552  }
 0x2c4   : > { %v3487_v12 = vpop.f32.mrb[0].mxu1 }
 0x2c5   : > { %v1244_v35 = vpop.f32.mrb[1].mxu1 }
 0x2c6   : > { %v3488_v36 = vpop.f32.mrb[2].mxu1 }
 0x2c7   : > { %v1469_v37 = vpack.c.bf16 %v3488_v36, %v3487_v12  ;;  %v1247_v38 = vpop.f32.mrb[3].mxu1 }
 0x2c8   : > { %v1468_v39 = vpack.c.bf16 %v1247_v38, %v1244_v35 }
 0x2ca   : > { %3505 = vmatprep.mubr.msk.bf16.mxu0 %vm1488_vm5, %v1468_v39 }
 0x2cb   : > { %3506 = vmatmul.mubr.msk.bf16.vlgmr.msra.gmra.mrb[16].mxu0 %vm1488_vm5, %v1469_v37 }
 0x2cc   : > { %v3491_v41 = vpop.f32.mrb[4].mxu1  ;;  %3522 = vmatpush3.bf16.msra.mxu0 %v3683_v34 }
 0x2cd   : > { %v1260_v42 = vpop.f32.mrb[5].mxu1  ;;  %3523 = vmatprep.subr.bf16.mxu0 %v3684_v40 }
 0x2ce   : > { %v3492_v43 = vpop.f32.mrb[6].mxu1 }
 0x2cf   : > { %v1471_v44 = vpack.c.bf16 %v3492_v43, %v3491_v41  ;;  %v1263_v45 = vpop.f32.mrb[7].mxu1 }
 0x2d0   : > { %v1470_v46 = vpack.c.bf16 %v1263_v45, %v1260_v42  ;;  %3524 = vmatpush3.bf16.msra.mxu0 %v3684_v40 }
 0x2d1   : > { %3581 = vmatprep.subr.bf16.mxu0 %v5230_v17 }
 0x2d2   : > { %3509 = vmatprep.mubr.msk.bf16.mxu0 %vm1488_vm5, %v1470_v46 }
 0x2d3   : > { %3510 = vmatmul.mubr.msk.bf16.gmra.mrb[20].mxu0 %vm1488_vm5, %v1471_v44 }
 0x2d4   : > { %v3495_v47 = vpop.f32.mrb[8].mxu1 }
 0x2d5   : > { %v1276_v48 = vpop.f32.mrb[9].mxu1 }
 0x2d6   : > { %v3496_v49 = vpop.f32.mrb[10].mxu1 }
 0x2d7   : > { %v1473_v50 = vpack.c.bf16 %v3496_v49, %v3495_v47  ;;  %v1279_v51 = vpop.f32.mrb[11].mxu1 }
 0x2d8   : > { %v1472_v52 = vpack.c.bf16 %v1279_v51, %v1276_v48 }
 0x2da   : > { %3513 = vmatprep.mubr.msk.bf16.mxu0 %vm1488_vm5, %v1472_v52 }
 0x2db   : > { %3514 = vmatmul.mubr.msk.bf16.gmra.mrb[24].mxu0 %vm1488_vm5, %v1473_v50 }
 0x2dc   : > { %v4297_v53 = vpop.f32.mrb[12].mxu1 }
 0x2dd   : > { %v4299_v54 = vpop.f32.mrb[13].mxu1 }
 0x2de   : > { %v4301_v55 = vpop.f32.mrb[14].mxu1 }
 0x2df   : > { %v1475_v56 = vpack.c.bf16 %v4301_v55, %v4297_v53  ;;  %v4305_v57 = vpop.f32.mrb[15].mxu1 }
 0x2e0   : > { %v1474_v58 = vpack.c.bf16 %v4305_v57, %v4299_v54 }
 0x2e2   : > { %3517 = vmatprep.mubr.msk.bf16.mxu0 %vm1488_vm5, %v1474_v58 }
 0x2e3   : > { %v3469_v59 = vpop.f32.mrb[0].mxu0  ;;  %3518 = vmatmul.mubr.msk.bf16.gmra.mrb[28].mxu0 %vm1488_vm5, %v1475_v56 }
 0x2e4   : > { %v4311_v60 = vsub.f32 %v3469_v59, %v3487_v12  ;;  %v1123_v61 = vpop.f32.mrb[1].mxu0 }
 0x2e5   : > { %v4313_v62 = vsub.f32 %v1123_v61, %v1244_v35  ;;  %v3470_v63 = vpop.f32.mrb[2].mxu0 }
 0x2e6   : > { %v4315_v0 = vsub.f32 %v3470_v63, %v3488_v36  ;;  %v1457_v1 = vpack.c.bf16 %v3470_v63, %v3469_v59  ;;  %v1126_v2 = vpop.f32.mrb[3].mxu0  ;;  %v1325_v7 = vmul.f32 %v4311_v60, %v4311_v60 }
 0x2e7   : > { %v1323_v3 = vmul.f32 %v4313_v62, %v4313_v62  ;;  %v4319_v4 = vsub.f32 %v1126_v2, %v1247_v38  ;;  %v1456_v5 = vpack.c.bf16 %v1126_v2, %v1123_v61 }
 0x2e8   : > { %v1326_v14 = vmul.f32 %v4315_v0, %v4315_v0 }
 0x2e9   : > { %v1324_v6 = vmul.f32 %v4319_v4, %v4319_v4  ;;  %1355 = vrot.lane.b32.xlu0 %v1323_v3, %s3974_s27  ;;  %3525 = vmatprep.mubr.msk.bf16.mxu0 %vm1488_vm5, %v1456_v5 }
 0x2eb   : > { %1357 = vrot.lane.b32.xlu1 %v1324_v6, %s3974_s27  ;;  %v3473_v8 = vpop.f32.mrb[4].mxu0  ;;  %3526 = vmatmul.mubr.msk.bf16.vlgmr.msra.gmra.mrb[16].mxu0 %vm1488_vm5, %v1457_v1 }
 0x2ec   : > { %v4329_v9 = vsub.f32 %v3473_v8, %v3491_v41  ;;  %v1139_v13 = vpop.f32.mrb[5].mxu0 }
 0x2ed   : > { %v4333_v10 = vsub.f32 %v1139_v13, %v1260_v42  ;;  %1359 = vrot.lane.b32.xlu0 %v1325_v7, %s3974_s27  ;;  %v3474_v15 = vpop.f32.mrb[6].mxu0 }
 0x2ee   : > { %v4336_v16 = vsub.f32 %v3474_v15, %v3492_v43  ;;  %v1459_v18 = vpack.c.bf16 %v3474_v15, %v3473_v8  ;;  %v1142_v19 = vpop.f32.mrb[7].mxu0  ;;  %v1329_v24 = vmul.f32 %v4329_v9, %v4329_v9 }
 0x2ef   : > { %v1327_v20 = vmul.f32 %v4333_v10, %v4333_v10  ;;  %v4340_v21 = vsub.f32 %v1142_v19, %v1263_v45  ;;  %v1458_v22 = vpack.c.bf16 %v1142_v19, %v1139_v13  ;;  %1361 = vrot.lane.b32.xlu1 %v1326_v14, %s3974_s27 }
 0x2f0   : > { %v1330_v28 = vmul.f32 %v4336_v16, %v4336_v16 }
 0x2f1   : > { %v1328_v23 = vmul.f32 %v4340_v21, %v4340_v21  ;;  %1363 = vrot.lane.b32.xlu0 %v1327_v20, %s3974_s27  ;;  %3529 = vmatprep.mubr.msk.bf16.mxu0 %vm1488_vm5, %v1458_v22 }
 0x2f3   : > { %1365 = vrot.lane.b32.xlu1 %v1328_v23, %s3974_s27  ;;  %v3477_v25 = vpop.f32.mrb[8].mxu0  ;;  %3530 = vmatmul.mubr.msk.bf16.gmra.mrb[20].mxu0 %vm1488_vm5, %v1459_v18 }
 0x2f4   : > { %v4351_v26 = vsub.f32 %v3477_v25, %v3495_v47  ;;  %v1155_v27 = vpop.f32.mrb[9].mxu0 }
 0x2f5   : > { %v4355_v29 = vsub.f32 %v1155_v27, %v1276_v48  ;;  %1367 = vrot.lane.b32.xlu0 %v1329_v24, %s3974_s27  ;;  %v3478_v30 = vpop.f32.mrb[10].mxu0 }
 0x2f6   : > { %v4358_v31 = vsub.f32 %v3478_v30, %v3496_v49  ;;  %v1461_v32 = vpack.c.bf16 %v3478_v30, %v3477_v25  ;;  %v1158_v33 = vpop.f32.mrb[11].mxu0  ;;  %v1333_v37 = vmul.f32 %v4351_v26, %v4351_v26 }
 0x2f7   : > { %v1331_v34 = vmul.f32 %v4355_v29, %v4355_v29  ;;  %v4362_v12 = vsub.f32 %v1158_v33, %v1279_v51  ;;  %v1460_v35 = vpack.c.bf16 %v1158_v33, %v1155_v27  ;;  %1369 = vrot.lane.b32.xlu1 %v1330_v28, %s3974_s27 }
 0x2f8   : > { %v1334_v41 = vmul.f32 %v4358_v31, %v4358_v31 }
 0x2f9   : > { %v1332_v36 = vmul.f32 %v4362_v12, %v4362_v12  ;;  %1371 = vrot.lane.b32.xlu0 %v1331_v34, %s3974_s27  ;;  %3533 = vmatprep.mubr.msk.bf16.mxu0 %vm1488_vm5, %v1460_v35  ;;  %v3685_v35 = vld [vmem:[%s5211_s13] sm:$0xff]  }
 0x2fa   : > { %3541 = vmatprep.subr.bf16.mxu1 %v3685_v35 }
 0x2fb   : > { %1373 = vrot.lane.b32.xlu1 %v1332_v36, %s3974_s27  ;;  %v3481_v38 = vpop.f32.mrb[12].mxu0  ;;  %3534 = vmatmul.mubr.msk.bf16.gmra.mrb[24].mxu0 %vm1488_vm5, %v1461_v32  ;;  %v3686_v36 = vld [vmem:[%s5211_s13 + $0x8] sm:$0xff]  }
 0x2fc   : > { %v4374_v39 = vsub.f32 %v3481_v38, %v4297_v53  ;;  %v1171_v40 = vpop.f32.mrb[13].mxu0  ;;  %3542 = vmatpush3.bf16.msra.mxu1 %v3685_v35 }
 0x2fd   : > { %v4379_v42 = vsub.f32 %v1171_v40, %v4299_v54  ;;  %1375 = vrot.lane.b32.xlu0 %v1333_v37, %s3974_s27  ;;  %v3482_v43 = vpop.f32.mrb[14].mxu0  ;;  %3543 = vmatprep.subr.bf16.mxu1 %v3686_v36 }
 0x2fe   : > { %v4383_v44 = vsub.f32 %v3482_v43, %v4301_v55  ;;  %v1463_v45 = vpack.c.bf16 %v3482_v43, %v3481_v38  ;;  %v1174_v46 = vpop.f32.mrb[15].mxu0  ;;  %v1337_v51 = vmul.f32 %v4374_v39, %v4374_v39 }
 0x2ff   : > { %v1335_v47 = vmul.f32 %v4379_v42, %v4379_v42  ;;  %v4388_v48 = vsub.f32 %v1174_v46, %v4305_v57  ;;  %v1462_v49 = vpack.c.bf16 %v1174_v46, %v1171_v40  ;;  %1377 = vrot.lane.b32.xlu1 %v1334_v41, %s3974_s27 }
 0x300   : > { %v1338_v52 = vmul.f32 %v4383_v44, %v4383_v44  ;;  %3544 = vmatpush3.bf16.msra.mxu1 %v3686_v36 }
 0x301   : > { %v1336_v50 = vmul.f32 %v4388_v48, %v4388_v48  ;;  %1379 = vrot.lane.b32.xlu0 %v1335_v47, %s3974_s27  ;;  %3537 = vmatprep.mubr.msk.bf16.mxu0 %vm1488_vm5, %v1462_v49 }
 0x303   : > { %3538 = vmatmul.mubr.msk.bf16.gmra.mrb[28].mxu0 %vm1488_vm5, %v1463_v45  ;;  %1381 = vrot.lane.b32.xlu1 %v1336_v50, %s3974_s27 }
 0x305   : > { %1383 = vrot.lane.b32.xlu0 %v1337_v51, %s3974_s27 }
 0x307   : > { %1385 = vrot.lane.b32.xlu1 %v1338_v52, %s3974_s27  ;;  %s5259_s27 = sld [smem:[#allocation11_spill]] (!%p3371_p6) }
 0x35b   : > { %v1356_v53 = vpop.permute.xlu0 %1355 }
 0x35c   : > { %v1404_v54 = vsel %vm1403_vm7, %v1356_v53, 0.0 }
 0x35d   : > { %v1358_v55 = vpop.permute.xlu1 %1357  ;;  %1405 = vadd.xlane.f32.xlu0 %v1404_v54 }
 0x35e   : > { %v1407_v56 = vsel %vm1403_vm7, %v1358_v55, 0.0 }
 0x35f   : > { %1408 = vadd.xlane.f32.xlu1 %v1407_v56  ;;  %v1360_v57 = vpop.permute.xlu0 %1359 }
 0x360   : > { %v1410_v58 = vsel %vm1403_vm7, %v1360_v57, 0.0  ;;  %v4442_v57 = vld [vmem:[%s5209_s11] ss:$0 sm:$0xff] }
 0x361   : > { %v1362_v59 = vpop.permute.xlu1 %1361  ;;  %1411 = vadd.xlane.f32.xlu0 %v1410_v58 }
 0x362   : > { %v1413_v63 = vsel %vm1403_vm7, %v1362_v59, 0.0 }
 0x363   : > { %v1364_v61 = vpop.permute.xlu0 %1363 }
 0x364   : > { %v1416_v1 = vsel %vm1403_vm7, %v1364_v61, 0.0  ;;  %v4448_v61 = vld [vmem:[%s5210_s12] ss:$0 sm:$0xff] }
 0x365   : > { %v1366_v2 = vpop.permute.xlu1 %1365  ;;  %1414 = vadd.xlane.f32.xlu0 %v1413_v63  ;;  %1417 = vadd.xlane.f32.xlu1 %v1416_v1 }
 0x366   : > { %v1419_v5 = vsel %vm1403_vm7, %v1366_v2, 0.0 }
 0x367   : > { %v1368_v3 = vpop.permute.xlu0 %1367 }
 0x368   : > { %v1422_v6 = vsel %vm1403_vm7, %v1368_v3, 0.0 }
 0x369   : > { %v1370_v7 = vpop.permute.xlu1 %1369  ;;  %1420 = vadd.xlane.f32.xlu0 %v1419_v5  ;;  %1423 = vadd.xlane.f32.xlu1 %v1422_v6 }
 0x36a   : > { %v1425_v13 = vsel %vm1403_vm7, %v1370_v7, 0.0 }
 0x36b   : > { %v1372_v8 = vpop.permute.xlu0 %1371 }
 0x36c   : > { %v1428_v14 = vsel %vm1403_vm7, %v1372_v8, 0.0 }
 0x36d   : > { %v1374_v15 = vpop.permute.xlu1 %1373  ;;  %1426 = vadd.xlane.f32.xlu0 %v1425_v13  ;;  %1429 = vadd.xlane.f32.xlu1 %v1428_v14 }
 0x36e   : > { %v1431_v19 = vsel %vm1403_vm7, %v1374_v15, 0.0 }
 0x36f   : > { %v1376_v18 = vpop.permute.xlu0 %1375 }
 0x370   : > { %v1434_v20 = vsel %vm1403_vm7, %v1376_v18, 0.0 }
 0x371   : > { %v1378_v22 = vpop.permute.xlu1 %1377  ;;  %1432 = vadd.xlane.f32.xlu0 %v1431_v19  ;;  %1435 = vadd.xlane.f32.xlu1 %v1434_v20 }
 0x372   : > { %v1437_v24 = vsel %vm1403_vm7, %v1378_v22, 0.0 }
 0x373   : > { %v1380_v23 = vpop.permute.xlu0 %1379 }
 0x374   : > { %v1440_v25 = vsel %vm1403_vm7, %v1380_v23, 0.0 }
 0x375   : > { %v1382_v27 = vpop.permute.xlu1 %1381  ;;  %1438 = vadd.xlane.f32.xlu0 %v1437_v24  ;;  %1441 = vadd.xlane.f32.xlu1 %v1440_v25 }
 0x376   : > { %v1443_v30 = vsel %vm1403_vm7, %v1382_v27, 0.0 }
 0x377   : > { %v1384_v28 = vpop.permute.xlu0 %1383 }
 0x378   : > { %v1446_v32 = vsel %vm1403_vm7, %v1384_v28, 0.0 }
 0x379   : > { %v1386_v33 = vpop.permute.xlu1 %1385  ;;  %1444 = vadd.xlane.f32.xlu0 %v1443_v30  ;;  %1447 = vadd.xlane.f32.xlu1 %v1446_v32 }
 0x37a   : > { %v1449_v34 = vsel %vm1403_vm7, %v1386_v33, 0.0 }
 0x37d   : > { %1450 = vadd.xlane.f32.xlu0 %v1449_v34 }
 0x3be   : > { %v3527_v37 = vpop.f32.mrb[16].mxu0 }
 0x3bf   : > { %v1680_v38 = vpop.f32.mrb[17].mxu0 }
 0x3c0   : > { %v3528_v40 = vpop.f32.mrb[18].mxu0 }
 0x3c1   : > { %v1683_v41 = vpop.f32.mrb[19].mxu0 }
 0x3c6   : > { %v3531_v43 = vpop.f32.mrb[20].mxu0 }
 0x3c7   : > { %v1696_v45 = vpop.f32.mrb[21].mxu0 }
 0x3c8   : > { %v3532_v46 = vpop.f32.mrb[22].mxu0 }
 0x3c9   : > { %v1699_v47 = vpop.f32.mrb[23].mxu0 }
 0x3ce   : > { %v4425_v49 = vpop.f32.mrb[24].mxu0 }
 0x3cf   : > { %v1712_v50 = vpop.f32.mrb[25].mxu0 }
 0x3d0   : > { %v4427_v51 = vpop.f32.mrb[26].mxu0 }
 0x3d1   : > { %v4429_v52 = vpop.f32.mrb[27].mxu0 }
 0x3d6   : > { %v4431_v53 = vpop.f32.mrb[28].mxu0 }
 0x3d7   : > { %v4433_v54 = vpop.f32.mrb[29].mxu0 }
 0x3d8   : > { %v4435_v55 = vpop.f32.mrb[30].mxu0 }
 0x3d9   : > { %v4437_v56 = vpop.f32.mrb[31].mxu0 }
 0x3ea   : > { %v1406_v58 = vpop.xlane.xlu0 %1405 }
 0x3eb   : > { %v1750_v59 = vmul.f32 %v4442_v57, %v1406_v58 }
 0x3ec   : > { %v1409_v63 = vpop.xlane.xlu1 %1408 }
 0x3ed   : > { %v1766_v1 = vadd.f32 %v1750_v59, %v1680_v38  ;;  %v1751_v2 = vmul.f32 %v4442_v57, %v1409_v63 }
 0x3ee   : > { %v1412_v3 = vpop.xlane.xlu0 %1411 }
 0x3ef   : > { %v4452_v5 = vadd.f32 %v4448_v61, %v1766_v1  ;;  %v1767_v6 = vadd.f32 %v1751_v2, %v1683_v41  ;;  %v1752_v7 = vmul.f32 %v4442_v57, %v1412_v3 }
 0x3f1   : > { %v3296_v8 = vmul.f32 -1.442695, %v4452_v5  ;;  %v4457_v13 = vadd.f32 %v4448_v61, %v1767_v6  ;;  %v1768_v14 = vadd.f32 %v3527_v37, %v1752_v7 }
 0x3f2   : > { %v1418_v15 = vpop.xlane.xlu1 %1417  ;;  %v1415_v18 = vpop.xlane.xlu0 %1414 }
 0x3f3   : > { %3689 = vpow2.f32 %v3296_v8  ;;  %v3297_v19 = vmul.f32 -1.442695, %v4457_v13  ;;  %v4461_v20 = vadd.f32 %v4448_v61, %v1768_v14  ;;  %v1754_v22 = vmul.f32 %v4442_v57, %v1418_v15 }
 0x3f4   : > { %v1753_v23 = vmul.f32 %v4442_v57, %v1415_v18 }
 0x3f5   : > { %3691 = vpow2.f32 %v3297_v19  ;;  %v3298_v24 = vmul.f32 -1.442695, %v4461_v20  ;;  %v1770_v25 = vadd.f32 %v1754_v22, %v1696_v45 }
 0x3f6   : > { %v1769_v27 = vadd.f32 %v3528_v40, %v1753_v23  ;;  %v1424_v28 = vpop.xlane.xlu1 %1423  ;;  %v1421_v30 = vpop.xlane.xlu0 %1420 }
 0x3f7   : > { %3693 = vpow2.f32 %v3298_v24  ;;  %v4467_v32 = vadd.f32 %v4448_v61, %v1770_v25  ;;  %v1756_v33 = vmul.f32 %v4442_v57, %v1424_v28  ;;  %v1755_v34 = vmul.f32 %v4442_v57, %v1421_v30 }
 0x3f8   : > { %v4472_v35 = vadd.f32 %v4448_v61, %v1769_v27 }
 0x3f9   : > { %v3300_v36 = vmul.f32 -1.442695, %v4467_v32  ;;  %v1772_v37 = vadd.f32 %v3531_v43, %v1756_v33  ;;  %v1771_v38 = vadd.f32 %v1755_v34, %v1699_v47 }
 0x3fa   : > { %v3299_v41 = vmul.f32 -1.442695, %v4472_v35  ;;  %v1430_v40 = vpop.xlane.xlu1 %1429  ;;  %v1427_v45 = vpop.xlane.xlu0 %1426 }
 0x3fb   : > { %3695 = vpow2.f32 %v3300_v36  ;;  %v4477_v58 = vadd.f32 %v4448_v61, %v1772_v37  ;;  %v4480_v59 = vadd.f32 %v4448_v61, %v1771_v38  ;;  %v1758_v63 = vmul.f32 %v4442_v57, %v1430_v40 }
 0x3fc   : > { %3697 = vpow2.f32 %v3299_v41  ;;  %v1757_v1 = vmul.f32 %v4442_v57, %v1427_v45 }
 0x3fd   : > { %v3690_v2 = vpop.eup %3689  ;;  %v3302_v43 = vmul.f32 -1.442695, %v4477_v58  ;;  %v3301_v47 = vmul.f32 -1.442695, %v4480_v59  ;;  %v1774_v3 = vadd.f32 %v1758_v63, %v1712_v50 }
 0x3fe   : > { %v1853_v6 = vadd.f32 1.0, %v3690_v2  ;;  %v1773_v7 = vadd.f32 %v3532_v46, %v1757_v1  ;;  %v1436_v8 = vpop.xlane.xlu1 %1435  ;;  %v1433_v14 = vpop.xlane.xlu0 %1432 }
 0x3ff   : > { %v3692_v15 = vpop.eup %3691  ;;  %3699 = vpow2.f32 %v3302_v43  ;;  %v4487_v18 = vadd.f32 %v4448_v61, %v1774_v3  ;;  %v1760_v19 = vmul.f32 %v4442_v57, %v1436_v8  ;;  %v1759_v22 = vmul.f32 %v4442_v57, %v1433_v14 }
 0x400   : > { %3701 = vrcp.f32 %v1853_v6  ;;  %v1854_v23 = vadd.f32 1.0, %v3692_v15  ;;  %v4492_v24 = vadd.f32 %v4448_v61, %v1773_v7 }
 0x401   : > { %v3694_v25 = vpop.eup %3693  ;;  %3703 = vpow2.f32 %v3301_v47  ;;  %v3304_v46 = vmul.f32 -1.442695, %v4487_v18  ;;  %v1776_v50 = vadd.f32 %v4425_v49, %v1760_v19  ;;  %v1775_v27 = vadd.f32 %v1759_v22, %v4429_v52 }
 0x402   : > { %3705 = vrcp.f32 %v1854_v23  ;;  %v1855_v28 = vadd.f32 1.0, %v3694_v25  ;;  %v3303_v30 = vmul.f32 -1.442695, %v4492_v24  ;;  %v1442_v33 = vpop.xlane.xlu1 %1441  ;;  %v1439_v34 = vpop.xlane.xlu0 %1438 }
 0x403   : > { %v4499_v36 = vadd.f32 %v4448_v61, %v1776_v50  ;;  %v4502_v37 = vadd.f32 %v4448_v61, %v1775_v27  ;;  %v1762_v38 = vmul.f32 %v4442_v57, %v1442_v33  ;;  %3707 = vpow2.f32 %v3304_v46 }
 0x404   : > { %v1761_v41 = vmul.f32 %v4442_v57, %v1439_v34  ;;  %3709 = vpow2.f32 %v3303_v30 }
 0x405   : > { %v3696_v49 = vpop.eup %3695  ;;  %v3306_v52 = vmul.f32 -1.442695, %v4499_v36  ;;  %v1778_v40 = vadd.f32 %v1762_v38, %v4433_v54  ;;  %3711 = vrcp.f32 %v1855_v28  ;;  %v3305_v1 = vmul.f32 -1.442695, %v4502_v37 }
 0x406   : > { %v3698_v45 = vpop.eup %3697  ;;  %v1857_v63 = vadd.f32 1.0, %v3696_v49  ;;  %v1777_v2 = vadd.f32 %v4427_v51, %v1761_v41  ;;  %v1448_v43 = vpop.xlane.xlu1 %1447 }
 0x407   : > { %v1445_v47 = vpop.xlane.xlu0 %1444  ;;  %v1856_v3 = vadd.f32 1.0, %v3698_v45  ;;  %3713 = vpow2.f32 %v3306_v52  ;;  %v4511_v6 = vadd.f32 %v4448_v61, %v1778_v40  ;;  %v1764_v7 = vmul.f32 %v4442_v57, %v1448_v43 }
 0x408   : > { %3715 = vrcp.f32 %v1857_v63  ;;  %v4515_v8 = vadd.f32 %v4448_v61, %v1777_v2  ;;  %v1763_v54 = vmul.f32 %v4442_v57, %v1445_v47 }
 0x409   : > { %v3700_v14 = vpop.eup %3699  ;;  %3717 = vrcp.f32 %v1856_v3  ;;  %v3308_v15 = vmul.f32 -1.442695, %v4511_v6  ;;  %v1780_v51 = vadd.f32 %v4431_v53, %v1764_v7 }
 0x40a   : > { %v3702_v19 = vpop.eup %3701  ;;  %3719 = vpow2.f32 %v3305_v1  ;;  %v3307_v22 = vmul.f32 -1.442695, %v4515_v8  ;;  %v1779_v23 = vadd.f32 %v1763_v54, %v4437_v56  ;;  %v1859_v33 = vadd.f32 1.0, %v3700_v14 }
 0x40b   : > { %v1451_v25 = vpop.xlane.xlu0 %1450  ;;  %v3704_v46 = vpop.eup %3703  ;;  %3721 = vpow2.f32 %v3308_v15  ;;  %v4523_v50 = vadd.f32 %v4448_v61, %v1780_v51  ;;  %v1901_v30 = vmul.f32 %v3702_v19, %v4452_v5 }
 0x40c   : > { %v1765_v27 = vmul.f32 %v4442_v57, %v1451_v25  ;;  %v3706_v28 = vpop.eup %3705  ;;  %v1858_v34 = vadd.f32 1.0, %v3704_v46  ;;  %v4528_v53 = vadd.f32 %v4448_v61, %v1779_v23  ;;  %3723 = vpow2.f32 %v3307_v22 }
 0x40d   : > { %v1902_v38 = vmul.f32 %v3706_v28, %v4457_v13  ;;  %v3310_v56 = vmul.f32 -1.442695, %v4523_v50  ;;  %v3708_v49 = vpop.eup %3707 }
 0x40e   : > { %v1781_v41 = vadd.f32 %v4435_v55, %v1765_v27  ;;  %3725 = vrcp.f32 %v1858_v34  ;;  %v3309_v52 = vmul.f32 -1.442695, %v4528_v53  ;;  %v3710_v57 = vpop.eup %3709  ;;  %v1861_v13 = vadd.f32 1.0, %v3708_v49 }
 0x40f   : > { %3727 = vpow2.f32 %v3310_v56  ;;  %v1921_v40 = vpack.c.bf16 %v1902_v38, %v1901_v30  ;;  %v3712_v45 = vpop.eup %3711  ;;  %v1860_v63 = vadd.f32 1.0, %v3710_v57 }
 0x410   : > { %v4535_v5 = vadd.f32 %v4448_v61, %v1781_v41  ;;  %3729 = vrcp.f32 %v1859_v33  ;;  %v1903_v3 = vmul.f32 %v3712_v45, %v4461_v20 }
 0x411   : > { %v3714_v1 = vpop.eup %3713  ;;  %3731 = vpow2.f32 %v3309_v52  ;;  %3545 = vmatprep.mubr.msk.bf16.mxu1 %vm1488_vm5, %v1921_v40 }
 0x412   : > { %v3311_v2 = vmul.f32 -1.442695, %v4535_v5  ;;  %v3716_v55 = vpop.eup %3715  ;;  %3733 = vrcp.f32 %v1860_v63  ;;  %v1863_v7 = vadd.f32 1.0, %v3714_v1 }
 0x413   : > { %v3718_v43 = vpop.eup %3717  ;;  %v1905_v46 = vmul.f32 %v3716_v55, %v4467_v32 }
 0x414   : > { %3735 = vpow2.f32 %v3311_v2  ;;  %v3720_v47 = vpop.eup %3719  ;;  %v1904_v61 = vmul.f32 %v3718_v43, %v4472_v35 }
 0x415   : > { %v3722_v54 = vpop.eup %3721  ;;  %3737 = vrcp.f32 %v1861_v13  ;;  %v1862_v14 = vadd.f32 1.0, %v3720_v47 }
 0x416   : > { %v1922_v15 = vpack.c.bf16 %v1904_v61, %v1903_v3  ;;  %v3724_v51 = vpop.eup %3723  ;;  %v1865_v22 = vadd.f32 1.0, %v3722_v54 }
 0x417   : > { %3739 = vrcp.f32 %v1862_v14  ;;  %v1864_v23 = vadd.f32 1.0, %v3724_v51 }
 0x418   : > { %v3726_v19 = vpop.eup %3725  ;;  %3741 = vrcp.f32 %v1863_v7  ;;  %3546 = vmatmul.mubr.msk.bf16.vlgmr.msra.gmra.mrb[16].mxu1 %vm1488_vm5, %v1922_v15  ;;  %v4563_v7 = vld [vmem:[%s5212_s14] ss:$0 sm:$0xff] }
 0x419   : > { %v3728_v25 = vpop.eup %3727  ;;  %v1906_v20 = vmul.f32 %v3726_v19, %v4480_v59  ;;  %3743 = vrcp.f32 %v1864_v23 }
 0x41a   : > { %v3730_v27 = vpop.eup %3729  ;;  %v1867_v35 = vadd.f32 1.0, %v3728_v25  ;;  %3745 = vrcp.f32 %v1865_v22 }
 0x41b   : > { %v3732_v28 = vpop.eup %3731  ;;  %v1923_v30 = vpack.c.bf16 %v1906_v20, %v1905_v46  ;;  %v1907_v56 = vmul.f32 %v3730_v27, %v4477_v58 }
 0x41c   : > { %v3734_v33 = vpop.eup %3733  ;;  %v1866_v34 = vadd.f32 1.0, %v3732_v28  ;;  %3747 = vrcp.f32 %v1867_v35 }
 0x41d   : > { %v1908_v41 = vmul.f32 %v3734_v33, %v4492_v24  ;;  %3549 = vmatprep.mubr.msk.bf16.mxu1 %vm1488_vm5, %v1923_v30 }
 0x41e   : > { %v3736_v38 = vpop.eup %3735  ;;  %3749 = vrcp.f32 %v1866_v34 }
 0x41f   : > { %v1868_v32 = vadd.f32 1.0, %v3736_v38  ;;  %v3738_v49 = vpop.eup %3737  ;;  %v1924_v59 = vpack.c.bf16 %v1908_v41, %v1907_v56 }
 0x420   : > { %v1909_v40 = vmul.f32 %v3738_v49, %v4487_v18 }
 0x421   : > { %3751 = vrcp.f32 %v1868_v32  ;;  %v3740_v52 = vpop.eup %3739  ;;  %3550 = vmatmul.mubr.msk.bf16.gmra.mrb[20].mxu1 %vm1488_vm5, %v1924_v59 }
 0x422   : > { %v3742_v57 = vpop.eup %3741  ;;  %v1910_v45 = vmul.f32 %v3740_v52, %v4502_v37 }
 0x423   : > { %v3744_v63 = vpop.eup %3743  ;;  %v1911_v24 = vmul.f32 %v3742_v57, %v4499_v36 }
 0x424   : > { %v1925_v58 = vpack.c.bf16 %v1910_v45, %v1909_v40  ;;  %v1912_v1 = vmul.f32 %v3744_v63, %v4515_v8  ;;  %v3746_v13 = vpop.eup %3745 }
 0x425   : > { %v1913_v47 = vmul.f32 %v3746_v13, %v4511_v6 }
 0x426   : > { %3553 = vmatprep.mubr.msk.bf16.mxu1 %vm1488_vm5, %v1925_v58  ;;  %v3748_v2 = vpop.eup %3747  ;;  %v1926_v55 = vpack.c.bf16 %v1912_v1, %v1911_v24 }
 0x427   : > { %v1915_v37 = vmul.f32 %v3748_v2, %v4523_v50 }
 0x428   : > { %v3750_v43 = vpop.eup %3749 }
 0x429   : > { %v1914_v3 = vmul.f32 %v3750_v43, %v4528_v53  ;;  %3554 = vmatmul.mubr.msk.bf16.gmra.mrb[24].mxu1 %vm1488_vm5, %v1926_v55 }
 0x42b   : > { %v3752_v18 = vpop.eup %3751  ;;  %v1927_v36 = vpack.c.bf16 %v1914_v3, %v1913_v47 }
 0x42c   : > { %v1916_v61 = vmul.f32 %v3752_v18, %v4535_v5 }
 0x42d   : > { %3557 = vmatprep.mubr.msk.bf16.mxu1 %vm1488_vm5, %v1927_v36 }
 0x42e   : > { %v1928_v8 = vpack.c.bf16 %v1916_v61, %v1915_v37 }
 0x431   : > { %3558 = vmatmul.mubr.msk.bf16.gmra.mrb[28].mxu1 %vm1488_vm5, %v1928_v8 }
 0x4eb   : > { %v3547_v6 = vpop.f32.mrb[16].mxu1 }
 0x4ec   : > { %v4566_v53 = vadd.f32 %v3547_v6, %v4563_v7  ;;  %v2006_v54 = vpop.f32.mrb[17].mxu1 }
 0x4ed   : > { %v4569_v50 = vadd.f32 %v4563_v7, %v2006_v54  ;;  %v3548_v5 = vpop.f32.mrb[18].mxu1 }
 0x4ee   : > { %v3325_v14 = vmul.f32 -1.442695, %v4566_v53  ;;  %v4573_v15 = vadd.f32 %v3548_v5, %v4563_v7  ;;  %v2009_v51 = vpop.f32.mrb[19].mxu1 }
 0x4ef   : > { %v3323_v19 = vmul.f32 -1.442695, %v4569_v50  ;;  %v4577_v22 = vadd.f32 %v4563_v7, %v2009_v51 }
 0x4f0   : > { %3753 = vpow2.f32 %v3325_v14  ;;  %v3326_v23 = vmul.f32 -1.442695, %v4573_v15 }
 0x4f1   : > { %3755 = vpow2.f32 %v3323_v19  ;;  %v3324_v25 = vmul.f32 -1.442695, %v4577_v22 }
 0x4f2   : > { %3757 = vpow2.f32 %v3326_v23 }
 0x4f3   : > { %3759 = vpow2.f32 %v3324_v25 }
 0x4f4   : > { %v3551_v46 = vpop.f32.mrb[20].mxu1 }
 0x4f5   : > { %v4582_v20 = vadd.f32 %v3551_v46, %v4563_v7  ;;  %v2022_v27 = vpop.f32.mrb[21].mxu1 }
 0x4f6   : > { %v4585_v35 = vadd.f32 %v4563_v7, %v2022_v27  ;;  %v3552_v28 = vpop.f32.mrb[22].mxu1 }
 0x4f7   : > { %v3329_v30 = vmul.f32 -1.442695, %v4582_v20  ;;  %v4589_v33 = vadd.f32 %v3552_v28, %v4563_v7  ;;  %v2025_v34 = vpop.f32.mrb[23].mxu1 }
 0x4f8   : > { %v3327_v38 = vmul.f32 -1.442695, %v4585_v35  ;;  %v4593_v56 = vadd.f32 %v4563_v7, %v2025_v34 }
 0x4f9   : > { %3761 = vpow2.f32 %v3329_v30  ;;  %v3330_v41 = vmul.f32 -1.442695, %v4589_v33 }
 0x4fa   : > { %v3754_v32 = vpop.eup %3753  ;;  %3763 = vpow2.f32 %v3327_v38  ;;  %v3328_v49 = vmul.f32 -1.442695, %v4593_v56 }
 0x4fb   : > { %v3756_v59 = vpop.eup %3755  ;;  %v2119_v52 = vadd.f32 1.0, %v3754_v32  ;;  %3765 = vpow2.f32 %v3330_v41 }
 0x4fc   : > { %v3758_v57 = vpop.eup %3757  ;;  %v2117_v40 = vadd.f32 1.0, %v3756_v59  ;;  %3767 = vpow2.f32 %v3328_v49  ;;  %v3555_v45 = vpop.f32.mrb[24].mxu1 }
 0x4fd   : > { %v3760_v63 = vpop.eup %3759  ;;  %3769 = vrcp.f32 %v2119_v52  ;;  %v2120_v58 = vadd.f32 1.0, %v3758_v57  ;;  %v4598_v24 = vadd.f32 %v3555_v45, %v4563_v7  ;;  %v2038_v1 = vpop.f32.mrb[25].mxu1 }
 0x4fe   : > { %3771 = vrcp.f32 %v2117_v40  ;;  %v2118_v13 = vadd.f32 1.0, %v3760_v63  ;;  %v4601_v2 = vadd.f32 %v4563_v7, %v2038_v1  ;;  %v3556_v55 = vpop.f32.mrb[26].mxu1 }
 0x4ff   : > { %3773 = vrcp.f32 %v2120_v58  ;;  %v3333_v43 = vmul.f32 -1.442695, %v4598_v24  ;;  %v4605_v47 = vadd.f32 %v3556_v55, %v4563_v7  ;;  %v2041_v3 = vpop.f32.mrb[27].mxu1 }
 0x500   : > { %3775 = vrcp.f32 %v2118_v13  ;;  %v3331_v18 = vmul.f32 -1.442695, %v4601_v2  ;;  %v4609_v37 = vadd.f32 %v4563_v7, %v2041_v3 }
 0x501   : > { %3777 = vpow2.f32 %v3333_v43  ;;  %v3334_v61 = vmul.f32 -1.442695, %v4605_v47 }
 0x502   : > { %3779 = vpow2.f32 %v3331_v18  ;;  %v3332_v36 = vmul.f32 -1.442695, %v4609_v37 }
 0x503   : > { %v3762_v8 = vpop.eup %3761  ;;  %3781 = vpow2.f32 %v3334_v61 }
 0x504   : > { %v3764_v6 = vpop.eup %3763  ;;  %v2123_v54 = vadd.f32 1.0, %v3762_v8  ;;  %3783 = vpow2.f32 %v3332_v36  ;;  %v3559_v5 = vpop.f32.mrb[28].mxu1 }
 0x505   : > { %v3766_v14 = vpop.eup %3765  ;;  %v2121_v51 = vadd.f32 1.0, %v3764_v6  ;;  %v4614_v19 = vadd.f32 %v3559_v5, %v4563_v7  ;;  %v2054_v23 = vpop.f32.mrb[29].mxu1 }
 0x506   : > { %v3768_v25 = vpop.eup %3767  ;;  %3785 = vrcp.f32 %v2123_v54  ;;  %v2124_v46 = vadd.f32 1.0, %v3766_v14  ;;  %v4617_v27 = vadd.f32 %v4563_v7, %v2054_v23  ;;  %v3560_v28 = vpop.f32.mrb[30].mxu1 }
 0x507   : > { %v3770_v30 = vpop.eup %3769  ;;  %3787 = vrcp.f32 %v2121_v51  ;;  %v2122_v34 = vadd.f32 1.0, %v3768_v25  ;;  %v3337_v38 = vmul.f32 -1.442695, %v4614_v19  ;;  %v4621_v41 = vadd.f32 %v3560_v28, %v4563_v7  ;;  %v2057_v32 = vpop.f32.mrb[31].mxu1 }
 0x508   : > { %v3772_v49 = vpop.eup %3771  ;;  %3789 = vrcp.f32 %v2124_v46  ;;  %v3335_v59 = vmul.f32 -1.442695, %v4617_v27  ;;  %v4625_v52 = vadd.f32 %v4563_v7, %v2057_v32  ;;  %v4638_v7 = vmul.f32 %v3770_v30, %v4566_v53 }
 0x509   : > { %v3774_v57 = vpop.eup %3773  ;;  %3791 = vrcp.f32 %v2122_v34  ;;  %v3338_v40 = vmul.f32 -1.442695, %v4621_v41  ;;  %v4629_v45 = vmul.f32 %v3772_v49, %v4569_v50 }
 0x50a   : > { %v3776_v63 = vpop.eup %3775  ;;  %3793 = vpow2.f32 %v3337_v38  ;;  %v3336_v58 = vmul.f32 -1.442695, %v4625_v52  ;;  %v4643_v36 = vmul.f32 %v3774_v57, %v4573_v15  ;;  %v2189_v6 = vsel %vm1488_vm5, %v4638_v7, 0.0 }
 0x50b   : > { %v3778_v1 = vpop.eup %3777  ;;  %3795 = vpow2.f32 %v3335_v59  ;;  %v2183_v13 = vsel %vm1488_vm5, %v4629_v45, 0.0  ;;  %v4635_v55 = vmul.f32 %v3776_v63, %v4577_v22 }
 0x50c   : > { %v3780_v43 = vpop.eup %3779  ;;  %v2127_v3 = vadd.f32 1.0, %v3778_v1  ;;  %3797 = vpow2.f32 %v3338_v40  ;;  %2184 = vadd.xlane.f32.xlu1 %v2183_v13  ;;  %v2192_v14 = vsel %vm1488_vm5, %v4643_v36, 0.0 }
 0x50d   : > { %v3782_v50 = vpop.eup %3781  ;;  %v2125_v18 = vadd.f32 1.0, %v3780_v43  ;;  %3799 = vpow2.f32 %v3336_v58  ;;  %v2186_v61 = vsel %vm1488_vm5, %v4635_v55, 0.0 }
 0x50e   : > { %v3784_v8 = vpop.eup %3783  ;;  %3801 = vrcp.f32 %v2127_v3  ;;  %v2128_v22 = vadd.f32 1.0, %v3782_v50  ;;  %2187 = vadd.xlane.f32.xlu0 %v2186_v61 }
 0x50f   : > { %3803 = vrcp.f32 %v2125_v18  ;;  %v2126_v53 = vadd.f32 1.0, %v3784_v8 }
 0x510   : > { %v3786_v54 = vpop.eup %3785  ;;  %3805 = vrcp.f32 %v2128_v22  ;;  %2190 = vadd.xlane.f32.xlu1 %v2189_v6 }
 0x511   : > { %v3788_v5 = vpop.eup %3787  ;;  %3807 = vrcp.f32 %v2126_v53  ;;  %v4658_v30 = vmul.f32 %v3786_v54, %v4582_v20 }
 0x512   : > { %v3790_v51 = vpop.eup %3789  ;;  %2193 = vadd.xlane.f32.xlu0 %v2192_v14  ;;  %v4650_v15 = vmul.f32 %v3788_v5, %v4585_v35 }
 0x513   : > { %v3792_v23 = vpop.eup %3791  ;;  %v4663_v59 = vmul.f32 %v3790_v51, %v4589_v33  ;;  %v2201_v20 = vsel %vm1488_vm5, %v4658_v30, 0.0 }
 0x514   : > { %v3794_v25 = vpop.eup %3793  ;;  %v2195_v46 = vsel %vm1488_vm5, %v4650_v15, 0.0  ;;  %v4655_v28 = vmul.f32 %v3792_v23, %v4593_v56 }
 0x515   : > { %v3796_v34 = vpop.eup %3795  ;;  %v2131_v38 = vadd.f32 1.0, %v3794_v25  ;;  %2196 = vadd.xlane.f32.xlu1 %v2195_v46  ;;  %v2204_v13 = vsel %vm1488_vm5, %v4663_v59, 0.0 }
 0x516   : > { %v3798_v32 = vpop.eup %3797  ;;  %v2129_v49 = vadd.f32 1.0, %v3796_v34  ;;  %v2198_v35 = vsel %vm1488_vm5, %v4655_v28, 0.0 }
 0x517   : > { %v3800_v57 = vpop.eup %3799  ;;  %3809 = vrcp.f32 %v2131_v38  ;;  %v2132_v40 = vadd.f32 1.0, %v3798_v32  ;;  %2199 = vadd.xlane.f32.xlu0 %v2198_v35 }
 0x518   : > { %v3802_v56 = vpop.eup %3801  ;;  %3811 = vrcp.f32 %v2129_v49  ;;  %v2130_v63 = vadd.f32 1.0, %v3800_v57 }
 0x519   : > { %v3804_v58 = vpop.eup %3803  ;;  %3813 = vrcp.f32 %v2132_v40  ;;  %2202 = vadd.xlane.f32.xlu1 %v2201_v20  ;;  %v4678_v18 = vmul.f32 %v3802_v56, %v4598_v24 }
 0x51a   : > { %v3806_v1 = vpop.eup %3805  ;;  %3815 = vrcp.f32 %v2130_v63  ;;  %v4670_v33 = vmul.f32 %v3804_v58, %v4601_v2 }
 0x51b   : > { %v3808_v43 = vpop.eup %3807  ;;  %2205 = vadd.xlane.f32.xlu0 %v2204_v13  ;;  %v4683_v8 = vmul.f32 %v3806_v1, %v4605_v47  ;;  %v2213_v2 = vsel %vm1488_vm5, %v4678_v18, 0.0 }
 0x51c   : > { %v2207_v3 = vsel %vm1488_vm5, %v4670_v33, 0.0  ;;  %v4675_v50 = vmul.f32 %v3808_v43, %v4609_v37 }
 0x51d   : > { %2208 = vadd.xlane.f32.xlu1 %v2207_v3  ;;  %v2216_v37 = vsel %vm1488_vm5, %v4683_v8, 0.0 }
 0x51e   : > { %v2210_v61 = vsel %vm1488_vm5, %v4675_v50, 0.0 }
 0x51f   : > { %2211 = vadd.xlane.f32.xlu0 %v2210_v61 }
 0x521   : > { %v3810_v22 = vpop.eup %3809  ;;  %2214 = vadd.xlane.f32.xlu1 %v2213_v2 }
 0x522   : > { %v3812_v53 = vpop.eup %3811  ;;  %v4698_v14 = vmul.f32 %v3810_v22, %v4614_v19  ;;  %v3687_v19 = vld [vmem:[%s5218_s20] sm:$0xff]  }
 0x523   : > { %v3814_v6 = vpop.eup %3813  ;;  %2217 = vadd.xlane.f32.xlu0 %v2216_v37  ;;  %v4690_v24 = vmul.f32 %v3812_v53, %v4617_v27  ;;  %3561 = vmatprep.subr.bf16.mxu1 %v3687_v19 }
 0x524   : > { %v3816_v54 = vpop.eup %3815  ;;  %v4703_v23 = vmul.f32 %v3814_v6, %v4621_v41  ;;  %v2225_v27 = vsel %vm1488_vm5, %v4698_v14, 0.0  ;;  %3562 = vmatpush3.bf16.msra.mxu1 %v3687_v19 }
 0x525   : > { %v2219_v47 = vsel %vm1488_vm5, %v4690_v24, 0.0  ;;  %v4695_v5 = vmul.f32 %v3816_v54, %v4625_v52 }
 0x526   : > { %2220 = vadd.xlane.f32.xlu1 %v2219_v47  ;;  %v2228_v25 = vsel %vm1488_vm5, %v4703_v23, 0.0 }
 0x527   : > { %v2222_v51 = vsel %vm1488_vm5, %v4695_v5, 0.0 }
 0x528   : > { %2223 = vadd.xlane.f32.xlu0 %v2222_v51 }
 0x52a   : > { %2226 = vadd.xlane.f32.xlu1 %v2225_v27 }
 0x52c   : > { %2229 = vadd.xlane.f32.xlu0 %v2228_v25 }
 0x599   : > { %v2185_v52 = vpop.xlane.xlu1 %2184 }
 0x59a   : > { %v2232_v46 = vmul.f32 0.03125, %v2185_v52 }
 0x59b   : > { %v2188_v34 = vpop.xlane.xlu0 %2187 }
 0x59c   : > { %v4713_v41 = vsub.f32 %v4629_v45, %v2232_v46  ;;  %v2233_v38 = vmul.f32 0.03125, %v2188_v34 }
 0x59d   : > { %v2191_v32 = vpop.xlane.xlu1 %2190 }
 0x59e   : > { %v4716_v49 = vsub.f32 %v4635_v55, %v2233_v38  ;;  %v2234_v35 = vmul.f32 0.03125, %v2191_v32  ;;  %v2264_v57 = vmul.f32 %v4713_v41, %v4713_v41 }
 0x59f   : > { %v2194_v40 = vpop.xlane.xlu0 %2193 }
 0x5a0   : > { %v4721_v56 = vsub.f32 %v4638_v7, %v2234_v35  ;;  %v2235_v63 = vmul.f32 0.03125, %v2194_v40  ;;  %v2280_v20 = vsel %vm1488_vm5, %v2264_v57, 0.0  ;;  %v2265_v45 = vmul.f32 %v4716_v49, %v4716_v49 }
 0x5a1   : > { %2281 = vadd.xlane.f32.xlu1 %v2280_v20 }
 0x5a2   : > { %v4727_v58 = vsub.f32 %v4643_v36, %v2235_v63  ;;  %v2197_v55 = vpop.xlane.xlu1 %2196  ;;  %v2283_v1 = vsel %vm1488_vm5, %v2265_v45, 0.0  ;;  %v2266_v13 = vmul.f32 %v4721_v56, %v4721_v56 }
 0x5a3   : > { %v2236_v43 = vmul.f32 0.03125, %v2197_v55  ;;  %2284 = vadd.xlane.f32.xlu0 %v2283_v1 }
 0x5a4   : > { %v2200_v7 = vpop.xlane.xlu0 %2199  ;;  %v2286_v3 = vsel %vm1488_vm5, %v2266_v13, 0.0  ;;  %v2267_v61 = vmul.f32 %v4727_v58, %v4727_v58 }
 0x5a5   : > { %v4736_v2 = vsub.f32 %v4650_v15, %v2236_v43  ;;  %v2237_v22 = vmul.f32 0.03125, %v2200_v7  ;;  %2287 = vadd.xlane.f32.xlu1 %v2286_v3 }
 0x5a6   : > { %v2203_v36 = vpop.xlane.xlu1 %2202  ;;  %v2289_v53 = vsel %vm1488_vm5, %v2267_v61, 0.0 }
 0x5a7   : > { %v4740_v37 = vsub.f32 %v4655_v28, %v2237_v22  ;;  %v2238_v6 = vmul.f32 0.03125, %v2203_v36  ;;  %2290 = vadd.xlane.f32.xlu0 %v2289_v53  ;;  %v2268_v54 = vmul.f32 %v4736_v2, %v4736_v2 }
 0x5a8   : > { %v2206_v47 = vpop.xlane.xlu0 %2205 }
 0x5a9   : > { %v4745_v51 = vsub.f32 %v4658_v30, %v2238_v6  ;;  %v2239_v27 = vmul.f32 0.03125, %v2206_v47  ;;  %v2292_v15 = vsel %vm1488_vm5, %v2268_v54, 0.0  ;;  %v2269_v25 = vmul.f32 %v4740_v37, %v4740_v37 }
 0x5aa   : > { %v2209_v19 = vpop.xlane.xlu1 %2208  ;;  %2293 = vadd.xlane.f32.xlu1 %v2292_v15 }
 0x5ab   : > { %v4751_v28 = vsub.f32 %v4663_v59, %v2239_v27  ;;  %v2240_v52 = vmul.f32 0.03125, %v2209_v19  ;;  %v2295_v46 = vsel %vm1488_vm5, %v2269_v25, 0.0  ;;  %v2270_v34 = vmul.f32 %v4745_v51, %v4745_v51 }
 0x5ac   : > { %2296 = vadd.xlane.f32.xlu0 %v2295_v46  ;;  %v2212_v30 = vpop.xlane.xlu0 %2211 }
 0x5ad   : > { %v4757_v38 = vsub.f32 %v4670_v33, %v2240_v52  ;;  %v2241_v32 = vmul.f32 0.03125, %v2212_v30  ;;  %v2298_v35 = vsel %vm1488_vm5, %v2270_v34, 0.0  ;;  %v2271_v57 = vmul.f32 %v4751_v28, %v4751_v28 }
 0x5ae   : > { %v2215_v40 = vpop.xlane.xlu1 %2214  ;;  %2299 = vadd.xlane.f32.xlu1 %v2298_v35 }
 0x5af   : > { %v4763_v59 = vsub.f32 %v4675_v50, %v2241_v32  ;;  %v2242_v63 = vmul.f32 0.03125, %v2215_v40  ;;  %v2301_v20 = vsel %vm1488_vm5, %v2271_v57, 0.0  ;;  %v2272_v45 = vmul.f32 %v4757_v38, %v4757_v38 }
 0x5b0   : > { %2302 = vadd.xlane.f32.xlu0 %v2301_v20  ;;  %v2218_v33 = vpop.xlane.xlu0 %2217 }
 0x5b1   : > { %v4769_v55 = vsub.f32 %v4678_v18, %v2242_v63  ;;  %v2243_v1 = vmul.f32 0.03125, %v2218_v33  ;;  %v2304_v13 = vsel %vm1488_vm5, %v2272_v45, 0.0  ;;  %v2273_v43 = vmul.f32 %v4763_v59, %v4763_v59 }
 0x5b2   : > { %2305 = vadd.xlane.f32.xlu1 %v2304_v13 }
 0x5b3   : > { %v4775_v50 = vsub.f32 %v4683_v8, %v2243_v1  ;;  %v2221_v7 = vpop.xlane.xlu1 %2220  ;;  %v2307_v3 = vsel %vm1488_vm5, %v2273_v43, 0.0  ;;  %v2274_v61 = vmul.f32 %v4769_v55, %v4769_v55 }
 0x5b4   : > { %v2244_v22 = vmul.f32 0.03125, %v2221_v7  ;;  %2308 = vadd.xlane.f32.xlu0 %v2307_v3 }
 0x5b5   : > { %v2224_v18 = vpop.xlane.xlu0 %2223  ;;  %v2310_v36 = vsel %vm1488_vm5, %v2274_v61, 0.0  ;;  %v2275_v53 = vmul.f32 %v4775_v50, %v4775_v50 }
 0x5b6   : > { %v4784_v6 = vsub.f32 %v4690_v24, %v2244_v22  ;;  %v2245_v54 = vmul.f32 0.03125, %v2224_v18  ;;  %2311 = vadd.xlane.f32.xlu1 %v2310_v36 }
 0x5b7   : > { %v2227_v8 = vpop.xlane.xlu1 %2226  ;;  %v2313_v47 = vsel %vm1488_vm5, %v2275_v53, 0.0 }
 0x5b8   : > { %v4788_v27 = vsub.f32 %v4695_v5, %v2245_v54  ;;  %v2246_v15 = vmul.f32 0.03125, %v2227_v8  ;;  %2314 = vadd.xlane.f32.xlu0 %v2313_v47  ;;  %v2276_v25 = vmul.f32 %v4784_v6, %v4784_v6 }
 0x5b9   : > { %v2230_v19 = vpop.xlane.xlu0 %2229 }
 0x5ba   : > { %v4793_v52 = vsub.f32 %v4698_v14, %v2246_v15  ;;  %v2247_v46 = vmul.f32 0.03125, %v2230_v19  ;;  %v2316_v24 = vsel %vm1488_vm5, %v2276_v25, 0.0  ;;  %v2277_v34 = vmul.f32 %v4788_v27, %v4788_v27 }
 0x5bb   : > { %2317 = vadd.xlane.f32.xlu1 %v2316_v24 }
 0x5bc   : > { %v4799_v30 = vsub.f32 %v4703_v23, %v2247_v46  ;;  %v2319_v5 = vsel %vm1488_vm5, %v2277_v34, 0.0  ;;  %v2278_v32 = vmul.f32 %v4793_v52, %v4793_v52  ;;  %v3688_v23 = vld [vmem:[%s5218_s20 + $0x8] sm:$0xff]   ;;  %v4815_v34 = vld [vmem:[%s5252_s17] ss:$0 sm:$0xff] }
 0x5bd   : > { %2320 = vadd.xlane.f32.xlu0 %v2319_v5  ;;  %3563 = vmatprep.subr.bf16.mxu1 %v3688_v23 }
 0x5be   : > { %v2322_v35 = vsel %vm1488_vm5, %v2278_v32, 0.0  ;;  %v2279_v14 = vmul.f32 %v4799_v30, %v4799_v30  ;;  %3564 = vmatpush3.bf16.msra.mxu1 %v3688_v23 }
 0x5bf   : > { %2323 = vadd.xlane.f32.xlu1 %v2322_v35 }
 0x5c0   : > { %v2325_v57 = vsel %vm1488_vm5, %v2279_v14, 0.0 }
 0x5c1   : > { %2326 = vadd.xlane.f32.xlu0 %v2325_v57 }
 0x62e   : > { %v2282_v40 = vpop.xlane.xlu1 %2281 }
 0x62f   : > { %v2328_v63 = vmul.f32 0.03125, %v2282_v40 }
 0x630   : > { %v2285_v20 = vpop.xlane.xlu0 %2284 }
 0x631   : > { %v2344_v45 = vadd.f32 1e-05, %v2328_v63  ;;  %v2329_v33 = vmul.f32 0.03125, %v2285_v20 }
 0x632   : > { %v2288_v1 = vpop.xlane.xlu1 %2287 }
 0x633   : > { %3817 = vrsqrt.f32 %v2344_v45  ;;  %v2345_v13 = vadd.f32 1e-05, %v2329_v33  ;;  %v2330_v43 = vmul.f32 0.03125, %v2288_v1 }
 0x634   : > { %v2291_v7 = vpop.xlane.xlu0 %2290 }
 0x635   : > { %3819 = vrsqrt.f32 %v2345_v13  ;;  %v2346_v3 = vadd.f32 1e-05, %v2330_v43  ;;  %v2331_v61 = vmul.f32 0.03125, %v2291_v7 }
 0x637   : > { %3821 = vrsqrt.f32 %v2346_v3  ;;  %v2347_v22 = vadd.f32 1e-05, %v2331_v61  ;;  %v2294_v18 = vpop.xlane.xlu1 %2293 }
 0x638   : > { %v2332_v36 = vmul.f32 0.03125, %v2294_v18 }
 0x639   : > { %3823 = vrsqrt.f32 %v2347_v22  ;;  %v2297_v53 = vpop.xlane.xlu0 %2296 }
 0x63a   : > { %v2348_v54 = vadd.f32 1e-05, %v2332_v36  ;;  %v2333_v8 = vmul.f32 0.03125, %v2297_v53 }
 0x63b   : > { %v2300_v47 = vpop.xlane.xlu1 %2299 }
 0x63c   : > { %3825 = vrsqrt.f32 %v2348_v54  ;;  %v2349_v15 = vadd.f32 1e-05, %v2333_v8  ;;  %v2334_v25 = vmul.f32 0.03125, %v2300_v47 }
 0x63d   : > { %v3818_v19 = vpop.eup %3817  ;;  %v2303_v46 = vpop.xlane.xlu0 %2302 }
 0x63e   : > { %v2376_v24 = vmul.f32 %v3818_v19, %v4713_v41  ;;  %3827 = vrsqrt.f32 %v2349_v15  ;;  %v2350_v5 = vadd.f32 1e-05, %v2334_v25  ;;  %v2335_v32 = vmul.f32 0.03125, %v2303_v46  ;;  %v4822_v41 = vld [vmem:[%s5206_s8] ss:$0 sm:$0xff] }
 0x63f   : > { %v3820_v35 = vpop.eup %3819  ;;  %v2306_v14 = vpop.xlane.xlu1 %2305 }
 0x640   : > { %v2377_v57 = vmul.f32 %v3820_v35, %v4716_v49  ;;  %3829 = vrsqrt.f32 %v2350_v5  ;;  %v2351_v23 = vadd.f32 1e-05, %v2335_v32  ;;  %v2336_v40 = vmul.f32 0.03125, %v2306_v14 }
 0x641   : > { %v3822_v63 = vpop.eup %3821  ;;  %v2309_v20 = vpop.xlane.xlu0 %2308  ;;  %v2398_v45 = vmul.f32 %v4815_v34, %v2376_v24 }
 0x642   : > { %v2378_v33 = vmul.f32 %v3822_v63, %v4721_v56  ;;  %3831 = vrsqrt.f32 %v2351_v23  ;;  %v2352_v1 = vadd.f32 1e-05, %v2336_v40  ;;  %v2337_v13 = vmul.f32 0.03125, %v2309_v20 }
 0x643   : > { %v3824_v43 = vpop.eup %3823  ;;  %v2312_v7 = vpop.xlane.xlu1 %2311  ;;  %v2399_v49 = vmul.f32 %v4815_v34, %v2377_v57  ;;  %v4829_v53 = vadd.f32 %v4822_v41, %v2398_v45 }
 0x644   : > { %v2400_v3 = vmul.f32 %v4815_v34, %v2378_v33  ;;  %v2379_v61 = vmul.f32 %v3824_v43, %v4727_v58  ;;  %3833 = vrsqrt.f32 %v2352_v1  ;;  %v2353_v22 = vadd.f32 1e-05, %v2337_v13 }
 0x645   : > { %v2338_v18 = vmul.f32 0.03125, %v2312_v7  ;;  %v2315_v36 = vpop.xlane.xlu0 %2314  ;;  %v4832_v56 = vadd.f32 %v4822_v41, %v2399_v49 }
 0x646   : > { %v3826_v54 = vpop.eup %3825  ;;  %v2401_v8 = vmul.f32 %v4815_v34, %v2379_v61  ;;  %3835 = vrsqrt.f32 %v2353_v22  ;;  %v2339_v47 = vmul.f32 0.03125, %v2315_v36  ;;  %v4839_v46 = vadd.f32 %v4822_v41, %v2400_v3 }
 0x647   : > { %v2380_v15 = vmul.f32 %v3826_v54, %v4736_v2  ;;  %v2354_v25 = vadd.f32 1e-05, %v2338_v18  ;;  %v2440_v58 = vpack.c.bf16 %v4832_v56, %v4829_v53 }
 0x648   : > { %v3828_v19 = vpop.eup %3827  ;;  %v4842_v24 = vadd.f32 %v4822_v41, %v2401_v8  ;;  %v2355_v5 = vadd.f32 1e-05, %v2339_v47  ;;  %v2318_v32 = vpop.xlane.xlu1 %2317 }
 0x649   : > { %v2381_v35 = vmul.f32 %v3828_v19, %v4740_v37  ;;  %3837 = vrsqrt.f32 %v2354_v25  ;;  %v2340_v14 = vmul.f32 0.03125, %v2318_v32  ;;  %3565 = vmatprep.mubr.msk.bf16.mxu1 %vm1488_vm5, %v2440_v58  ;;  %v2402_v40 = vmul.f32 %v4815_v34, %v2380_v15 }
 0x64a   : > { %v3830_v2 = vpop.eup %3829  ;;  %3839 = vrsqrt.f32 %v2355_v5  ;;  %v2321_v57 = vpop.xlane.xlu0 %2320  ;;  %v2441_v23 = vpack.c.bf16 %v4842_v24, %v4839_v46 }
 0x64b   : > { %v2382_v63 = vmul.f32 %v3830_v2, %v4745_v51  ;;  %v2356_v20 = vadd.f32 1e-05, %v2340_v14  ;;  %v2341_v45 = vmul.f32 0.03125, %v2321_v57  ;;  %v2403_v33 = vmul.f32 %v4815_v34, %v2381_v35 }
 0x64c   : > { %v3832_v1 = vpop.eup %3831  ;;  %v2324_v37 = vpop.xlane.xlu1 %2323  ;;  %3566 = vmatmul.mubr.msk.bf16.vlgmr.msra.gmra.mrb[32].mxu1 %vm1488_vm5, %v2441_v23  ;;  %v4854_v61 = vadd.f32 %v4822_v41, %v2402_v40 }
 0x64d   : > { %v2383_v13 = vmul.f32 %v3832_v1, %v4751_v28  ;;  %3841 = vrsqrt.f32 %v2356_v20  ;;  %v2357_v43 = vadd.f32 1e-05, %v2341_v45  ;;  %v2342_v7 = vmul.f32 0.03125, %v2324_v37 }
 0x64e   : > { %v3834_v49 = vpop.eup %3833  ;;  %v2327_v3 = vpop.xlane.xlu0 %2326  ;;  %v4857_v51 = vadd.f32 %v4822_v41, %v2403_v33  ;;  %v2404_v22 = vmul.f32 %v4815_v34, %v2382_v63 }
 0x64f   : > { %v2384_v18 = vmul.f32 %v3834_v49, %v4757_v38  ;;  %3843 = vrsqrt.f32 %v2357_v43  ;;  %v2358_v36 = vadd.f32 1e-05, %v2342_v7  ;;  %v2343_v54 = vmul.f32 0.03125, %v2327_v3 }
 0x650   : > { %v3836_v8 = vpop.eup %3835  ;;  %v2442_v28 = vpack.c.bf16 %v4857_v51, %v4854_v61  ;;  %v2405_v47 = vmul.f32 %v4815_v34, %v2383_v13  ;;  %v4868_v19 = vadd.f32 %v4822_v41, %v2404_v22 }
 0x651   : > { %v2385_v15 = vmul.f32 %v3836_v8, %v4763_v59  ;;  %3845 = vrsqrt.f32 %v2358_v36  ;;  %v2359_v25 = vadd.f32 1e-05, %v2343_v54  ;;  %v2406_v58 = vmul.f32 %v4815_v34, %v2384_v18 }
 0x652   : > { %3569 = vmatprep.mubr.msk.bf16.mxu1 %vm1488_vm5, %v2442_v28  ;;  %v4871_v38 = vadd.f32 %v4822_v41, %v2405_v47  ;;  %v4928_v47 = vld [vmem:[%s5219_s21] ss:$0 sm:$0xff] }
 0x653   : > { %v3838_v5 = vpop.eup %3837  ;;  %3847 = vrsqrt.f32 %v2359_v25  ;;  %v2407_v32 = vmul.f32 %v4815_v34, %v2385_v15  ;;  %v4879_v57 = vadd.f32 %v4822_v41, %v2406_v58 }
 0x654   : > { %v3840_v35 = vpop.eup %3839  ;;  %v2386_v14 = vmul.f32 %v3838_v5, %v4769_v55  ;;  %v2443_v59 = vpack.c.bf16 %v4871_v38, %v4868_v19 }
 0x655   : > { %v2387_v2 = vmul.f32 %v3840_v35, %v4775_v50  ;;  %v4882_v23 = vadd.f32 %v4822_v41, %v2407_v32 }
 0x656   : > { %3570 = vmatmul.mubr.msk.bf16.gmra.mrb[36].mxu1 %vm1488_vm5, %v2443_v59  ;;  %v2408_v40 = vmul.f32 %v4815_v34, %v2386_v14 }
 0x657   : > { %v3842_v63 = vpop.eup %3841  ;;  %v2444_v20 = vpack.c.bf16 %v4882_v23, %v4879_v57  ;;  %v2409_v55 = vmul.f32 %v4815_v34, %v2387_v2 }
 0x658   : > { %v2388_v45 = vmul.f32 %v3842_v63, %v4784_v6  ;;  %v4892_v50 = vadd.f32 %v4822_v41, %v2408_v40 }
 0x659   : > { %v3844_v33 = vpop.eup %3843  ;;  %3573 = vmatprep.mubr.msk.bf16.mxu1 %vm1488_vm5, %v2444_v20  ;;  %v4895_v1 = vadd.f32 %v4822_v41, %v2409_v55 }
 0x65a   : > { %v2389_v37 = vmul.f32 %v3844_v33, %v4788_v27  ;;  %v2410_v13 = vmul.f32 %v4815_v34, %v2388_v45 }
 0x65b   : > { %v3846_v43 = vpop.eup %3845  ;;  %v2445_v7 = vpack.c.bf16 %v4895_v1, %v4892_v50 }
 0x65c   : > { %v2390_v49 = vmul.f32 %v3846_v43, %v4793_v52  ;;  %v2411_v6 = vmul.f32 %v4815_v34, %v2389_v37  ;;  %v4906_v18 = vadd.f32 %v4822_v41, %v2410_v13 }
 0x65d   : > { %v3848_v3 = vpop.eup %3847 }
 0x65e   : > { %v2391_v22 = vmul.f32 %v3848_v3, %v4799_v30  ;;  %3574 = vmatmul.mubr.msk.bf16.gmra.mrb[40].mxu1 %vm1488_vm5, %v2445_v7  ;;  %v4909_v27 = vadd.f32 %v4822_v41, %v2411_v6  ;;  %v2412_v36 = vmul.f32 %v4815_v34, %v2390_v49 }
 0x660   : > { %v2446_v54 = vpack.c.bf16 %v4909_v27, %v4906_v18  ;;  %v2413_v52 = vmul.f32 %v4815_v34, %v2391_v22  ;;  %v4917_v8 = vadd.f32 %v4822_v41, %v2412_v36 }
 0x662   : > { %3577 = vmatprep.mubr.msk.bf16.mxu1 %vm1488_vm5, %v2446_v54  ;;  %v4920_v30 = vadd.f32 %v4822_v41, %v2413_v52 }
 0x664   : > { %v2447_v28 = vpack.c.bf16 %v4920_v30, %v4917_v8 }
 0x666   : > { %3578 = vmatmul.mubr.msk.bf16.gmra.mrb[44].mxu1 %vm1488_vm5, %v2447_v28 }
 0x71f   : > { %v3567_v15 = vpop.f32.mrb[32].mxu1 }
 0x720   : > { %v4931_v34 = vadd.f32 %v3567_v15, %v4928_v47  ;;  %v2525_v25 = vpop.f32.mrb[33].mxu1 }
 0x721   : > { %v4934_v58 = vadd.f32 %v4928_v47, %v2525_v25  ;;  %v3568_v41 = vpop.f32.mrb[34].mxu1 }
 0x722   : > { %v3354_v5 = vmul.f32 -1.442695, %v4931_v34  ;;  %v4938_v32 = vadd.f32 %v3568_v41, %v4928_v47  ;;  %v2528_v35 = vpop.f32.mrb[35].mxu1 }
 0x723   : > { %v3352_v14 = vmul.f32 -1.442695, %v4934_v58  ;;  %v4942_v59 = vadd.f32 %v4928_v47, %v2528_v35 }
 0x724   : > { %3849 = vpow2.f32 %v3354_v5  ;;  %v3355_v2 = vmul.f32 -1.442695, %v4938_v32 }
 0x725   : > { %3851 = vpow2.f32 %v3352_v14  ;;  %v3353_v40 = vmul.f32 -1.442695, %v4942_v59 }
 0x726   : > { %3853 = vpow2.f32 %v3355_v2 }
 0x727   : > { %3855 = vpow2.f32 %v3353_v40 }
 0x729   : > { %v3571_v63 = vpop.f32.mrb[36].mxu1 }
 0x72a   : > { %v4947_v20 = vadd.f32 %v3571_v63, %v4928_v47  ;;  %v2541_v55 = vpop.f32.mrb[37].mxu1 }
 0x72b   : > { %v4950_v45 = vadd.f32 %v4928_v47, %v2541_v55  ;;  %v3572_v33 = vpop.f32.mrb[38].mxu1 }
 0x72c   : > { %v3358_v37 = vmul.f32 -1.442695, %v4947_v20  ;;  %v4954_v13 = vadd.f32 %v3572_v33, %v4928_v47  ;;  %v2544_v43 = vpop.f32.mrb[39].mxu1 }
 0x72d   : > { %v3356_v7 = vmul.f32 -1.442695, %v4950_v45  ;;  %v4958_v49 = vadd.f32 %v4928_v47, %v2544_v43 }
 0x72e   : > { %v3850_v6 = vpop.eup %3849  ;;  %3857 = vpow2.f32 %v3358_v37  ;;  %v3359_v3 = vmul.f32 -1.442695, %v4954_v13 }
 0x72f   : > { %v3852_v22 = vpop.eup %3851  ;;  %v2638_v36 = vadd.f32 1.0, %v3850_v6  ;;  %3859 = vpow2.f32 %v3356_v7  ;;  %v3357_v25 = vmul.f32 -1.442695, %v4958_v49 }
 0x730   : > { %v3854_v54 = vpop.eup %3853  ;;  %v2636_v52 = vadd.f32 1.0, %v3852_v22  ;;  %3861 = vpow2.f32 %v3359_v3 }
 0x731   : > { %v3856_v28 = vpop.eup %3855  ;;  %3863 = vrcp.f32 %v2638_v36  ;;  %v2639_v15 = vadd.f32 1.0, %v3854_v54  ;;  %v3575_v41 = vpop.f32.mrb[40].mxu1 }
 0x732   : > { %3865 = vrcp.f32 %v2636_v52  ;;  %v2637_v5 = vadd.f32 1.0, %v3856_v28  ;;  %v4963_v35 = vadd.f32 %v3575_v41, %v4928_v47  ;;  %v2557_v14 = vpop.f32.mrb[41].mxu1 }
 0x733   : > { %3867 = vrcp.f32 %v2639_v15  ;;  %v4966_v2 = vadd.f32 %v4928_v47, %v2557_v14  ;;  %v3576_v40 = vpop.f32.mrb[42].mxu1 }
 0x734   : > { %3869 = vrcp.f32 %v2637_v5  ;;  %v3362_v63 = vmul.f32 -1.442695, %v4963_v35  ;;  %v4970_v55 = vadd.f32 %v3576_v40, %v4928_v47  ;;  %v2560_v33 = vpop.f32.mrb[43].mxu1 }
 0x735   : > { %3871 = vpow2.f32 %v3357_v25  ;;  %v3360_v37 = vmul.f32 -1.442695, %v4966_v2  ;;  %v4974_v43 = vadd.f32 %v4928_v47, %v2560_v33 }
 0x736   : > { %3873 = vpow2.f32 %v3362_v63  ;;  %v3363_v7 = vmul.f32 -1.442695, %v4970_v55 }
 0x737   : > { %3875 = vpow2.f32 %v3360_v37  ;;  %v3361_v6 = vmul.f32 -1.442695, %v4974_v43 }
 0x738   : > { %v3858_v3 = vpop.eup %3857  ;;  %3877 = vpow2.f32 %v3363_v7 }
 0x739   : > { %v3860_v22 = vpop.eup %3859  ;;  %v2642_v36 = vadd.f32 1.0, %v3858_v3  ;;  %3879 = vpow2.f32 %v3361_v6  ;;  %v3579_v54 = vpop.f32.mrb[44].mxu1  ;;  %v4992_v3 = vld [vmem:[%s5220_s22] ss:$0 sm:$0xff] }
 0x73a   : > { %v3862_v52 = vpop.eup %3861  ;;  %v2640_v28 = vadd.f32 1.0, %v3860_v22  ;;  %v4979_v15 = vadd.f32 %v3579_v54, %v4928_v47  ;;  %v2573_v25 = vpop.f32.mrb[45].mxu1 }
 0x73b   : > { %v3864_v41 = vpop.eup %3863  ;;  %3881 = vrcp.f32 %v2642_v36  ;;  %v2643_v5 = vadd.f32 1.0, %v3862_v52  ;;  %v4982_v14 = vadd.f32 %v4928_v47, %v2573_v25  ;;  %v3580_v40 = vpop.f32.mrb[46].mxu1 }
 0x73c   : > { %v3866_v63 = vpop.eup %3865  ;;  %v2686_v33 = vmul.f32 %v3864_v41, %v4931_v34  ;;  %3883 = vrcp.f32 %v2640_v28  ;;  %v3366_v37 = vmul.f32 -1.442695, %v4979_v15  ;;  %v4987_v7 = vadd.f32 %v3580_v40, %v4928_v47  ;;  %v2576_v6 = vpop.f32.mrb[47].mxu1 }
 0x73d   : > { %v3868_v22 = vpop.eup %3867  ;;  %v2684_v36 = vmul.f32 %v3866_v63, %v4934_v58  ;;  %3885 = vrcp.f32 %v2643_v5  ;;  %v3364_v54 = vmul.f32 -1.442695, %v4982_v14  ;;  %v4997_v34 = vadd.f32 %v4928_v47, %v2576_v6 }
 0x73e   : > { %v3870_v52 = vpop.eup %3869  ;;  %v2687_v28 = vmul.f32 %v3868_v22, %v4938_v32  ;;  %3887 = vpow2.f32 %v3366_v37  ;;  %v3367_v25 = vmul.f32 -1.442695, %v4987_v7  ;;  %v2709_v47 = vmul.f32 %v4992_v3, %v2686_v33 }
 0x73f   : > { %v3872_v41 = vpop.eup %3871  ;;  %v2685_v40 = vmul.f32 %v3870_v52, %v4942_v59  ;;  %3889 = vpow2.f32 %v3364_v54  ;;  %v3365_v11 = vmul.f32 -1.442695, %v4997_v34  ;;  %v2707_v58 = vmul.f32 %v4992_v3, %v2684_v36 }
 0x740   : > { %v3874_v5 = vpop.eup %3873  ;;  %v2641_v63 = vadd.f32 1.0, %v3872_v41  ;;  %3891 = vpow2.f32 %v3367_v25  ;;  %v2710_v52 = vmul.f32 %v4992_v3, %v2687_v28 }
 0x741   : > { %v3876_v6 = vpop.eup %3875  ;;  %v2646_v17 = vadd.f32 1.0, %v3874_v5  ;;  %3893 = vpow2.f32 %v3365_v11  ;;  %v2723_v32 = vsel %vm1488_vm5, %v2707_v58, 0.0  ;;  %v2708_v37 = vmul.f32 %v4992_v3, %v2685_v40 }
 0x742   : > { %v3878_v22 = vpop.eup %3877  ;;  %3895 = vrcp.f32 %v2641_v63  ;;  %v2644_v59 = vadd.f32 1.0, %v3876_v6  ;;  %2724 = vadd.xlane.f32.xlu1 %v2723_v32  ;;  %v2729_v11 = vsel %vm1488_vm5, %v2709_v47, 0.0 }
 0x743   : > { %v3880_v54 = vpop.eup %3879  ;;  %3897 = vrcp.f32 %v2646_v17  ;;  %v2726_v36 = vsel %vm1488_vm5, %v2708_v37, 0.0  ;;  %v2647_v25 = vadd.f32 1.0, %v3878_v22  ;;  %v2732_v17 = vsel %vm1488_vm5, %v2710_v52, 0.0 }
 0x744   : > { %3899 = vrcp.f32 %v2644_v59  ;;  %v2645_v33 = vadd.f32 1.0, %v3880_v54  ;;  %2727 = vadd.xlane.f32.xlu0 %v2726_v36 }
 0x745   : > { %v3882_v41 = vpop.eup %3881 }
 0x746   : > { %v3884_v58 = vpop.eup %3883  ;;  %3901 = vrcp.f32 %v2645_v33  ;;  %2730 = vadd.xlane.f32.xlu1 %v2729_v11  ;;  %v2690_v5 = vmul.f32 %v3882_v41, %v4947_v20 }
 0x747   : > { %v3886_v40 = vpop.eup %3885  ;;  %v2688_v63 = vmul.f32 %v3884_v58, %v4950_v45  ;;  %3903 = vrcp.f32 %v2647_v25 }
 0x748   : > { %v3888_v6 = vpop.eup %3887  ;;  %2733 = vadd.xlane.f32.xlu0 %v2732_v17  ;;  %v2713_v36 = vmul.f32 %v4992_v3, %v2690_v5  ;;  %v2691_v25 = vmul.f32 %v3886_v40, %v4954_v13 }
 0x749   : > { %v3890_v28 = vpop.eup %3889  ;;  %v2650_v32 = vadd.f32 1.0, %v3888_v6  ;;  %v2711_v37 = vmul.f32 %v4992_v3, %v2688_v63 }
 0x74a   : > { %v3892_v22 = vpop.eup %3891  ;;  %v2648_v59 = vadd.f32 1.0, %v3890_v28  ;;  %v2741_v5 = vsel %vm1488_vm5, %v2713_v36, 0.0  ;;  %v2714_v13 = vmul.f32 %v4992_v3, %v2691_v25 }
 0x74b   : > { %v3894_v47 = vpop.eup %3893  ;;  %3905 = vrcp.f32 %v2650_v32  ;;  %v2735_v54 = vsel %vm1488_vm5, %v2711_v37, 0.0  ;;  %v2651_v45 = vadd.f32 1.0, %v3892_v22 }
 0x74c   : > { %v3896_v20 = vpop.eup %3895  ;;  %3907 = vrcp.f32 %v2648_v59  ;;  %v2649_v33 = vadd.f32 1.0, %v3894_v47  ;;  %2736 = vadd.xlane.f32.xlu1 %v2735_v54 }
 0x74d   : > { %v3898_v52 = vpop.eup %3897  ;;  %v2689_v41 = vmul.f32 %v3896_v20, %v4958_v49 }
 0x74e   : > { %v3900_v11 = vpop.eup %3899  ;;  %3909 = vrcp.f32 %v2649_v33  ;;  %v2694_v58 = vmul.f32 %v3898_v52, %v4963_v35 }
 0x74f   : > { %v2692_v63 = vmul.f32 %v3900_v11, %v4966_v2  ;;  %v2712_v17 = vmul.f32 %v4992_v3, %v2689_v41  ;;  %3911 = vrcp.f32 %v2651_v45 }
 0x750   : > { %v3902_v6 = vpop.eup %3901  ;;  %2742 = vadd.xlane.f32.xlu1 %v2741_v5  ;;  %v2717_v37 = vmul.f32 %v4992_v3, %v2694_v58 }
 0x751   : > { %v2693_v28 = vmul.f32 %v3902_v6, %v4974_v43  ;;  %v2738_v32 = vsel %vm1488_vm5, %v2712_v17, 0.0  ;;  %v2715_v49 = vmul.f32 %v4992_v3, %v2692_v63  ;;  %v3904_v40 = vpop.eup %3903  ;;  %v2744_v43 = vsel %vm1488_vm5, %v2714_v13, 0.0 }
 0x752   : > { %2739 = vadd.xlane.f32.xlu0 %v2738_v32  ;;  %v2695_v59 = vmul.f32 %v3904_v40, %v4970_v55  ;;  %v2753_v45 = vsel %vm1488_vm5, %v2717_v37, 0.0 }
 0x753   : > { %v2747_v35 = vsel %vm1488_vm5, %v2715_v49, 0.0  ;;  %v2716_v2 = vmul.f32 %v4992_v3, %v2693_v28  ;;  %v5253_v28 = vmov 0.0  }
 0x754   : > { %2748 = vadd.xlane.f32.xlu1 %v2747_v35  ;;  %v2718_v25 = vmul.f32 %v4992_v3, %v2695_v59  ;;  %3597 = vmatprep.mubr.msk.bf16.mxu0 %vm3975_vm6, %v5253_v28 }
 0x755   : > { %v3906_v22 = vpop.eup %3905  ;;  %v2750_v20 = vsel %vm1488_vm5, %v2716_v2, 0.0 }
 0x756   : > { %v3908_v47 = vpop.eup %3907  ;;  %2745 = vadd.xlane.f32.xlu0 %v2744_v43  ;;  %v2698_v54 = vmul.f32 %v3906_v22, %v4979_v15  ;;  %v2756_v63 = vsel %vm1488_vm5, %v2718_v25, 0.0 }
 0x757   : > { %v2696_v36 = vmul.f32 %v3908_v47, %v4982_v14 }
 0x758   : > { %v3910_v33 = vpop.eup %3909  ;;  %2754 = vadd.xlane.f32.xlu1 %v2753_v45  ;;  %v2721_v14 = vmul.f32 %v4992_v3, %v2698_v54 }
 0x759   : > { %v2697_v52 = vmul.f32 %v3910_v33, %v4997_v34  ;;  %v2719_v55 = vmul.f32 %v4992_v3, %v2696_v36  ;;  %v3912_v41 = vpop.eup %3911 }
 0x75a   : > { %2751 = vadd.xlane.f32.xlu0 %v2750_v20  ;;  %v2699_v58 = vmul.f32 %v3912_v41, %v4987_v7  ;;  %v2765_v17 = vsel %vm1488_vm5, %v2721_v14, 0.0 }
 0x75b   : > { %v2759_v11 = vsel %vm1488_vm5, %v2719_v55, 0.0  ;;  %v2720_v15 = vmul.f32 %v4992_v3, %v2697_v52 }
 0x75c   : > { %2760 = vadd.xlane.f32.xlu1 %v2759_v11  ;;  %v2722_v5 = vmul.f32 %v4992_v3, %v2699_v58 }
 0x75d   : > { %v2762_v34 = vsel %vm1488_vm5, %v2720_v15, 0.0 }
 0x75e   : > { %2757 = vadd.xlane.f32.xlu0 %v2756_v63  ;;  %v2768_v6 = vsel %vm1488_vm5, %v2722_v5, 0.0 }
 0x760   : > { %2766 = vadd.xlane.f32.xlu1 %v2765_v17 }
 0x762   : > { %2763 = vadd.xlane.f32.xlu0 %v2762_v34 }
 0x766   : > { %2769 = vadd.xlane.f32.xlu0 %v2768_v6 }
 0x7cf   : > { %v2725_v32 = vpop.xlane.xlu1 %2724 }
 0x7d0   : > { %v2771_v7 = vmul.f32 %v2725_v32, %v4313_v62 }
 0x7d1   : > { %v2728_v13 = vpop.xlane.xlu0 %2727 }
 0x7d2   : > { %v2787_v49 = vsel %vm1488_vm5, %v4829_v53, %v2771_v7  ;;  %v2772_v40 = vmul.f32 %v2728_v13, %v4319_v4 }
 0x7d3   : > { %v2731_v35 = vpop.xlane.xlu1 %2730  ;;  %v2804_v37 = vsel %vm2803_vm8, %v2787_v49, 1.0 }
 0x7d4   : > { %v2788_v3 = vsel %vm1488_vm5, %v4832_v56, %v2772_v40  ;;  %v2773_v2 = vmul.f32 %v2731_v35, %v4311_v60  ;;  %v5254_v35 = vlaneseq }
 0x7d5   : > { %v2805_v22 = vsel %vm2803_vm8, %v2788_v3, 1.0  ;;  %v2734_v59 = vpop.xlane.xlu0 %2733 }
 0x7d6   : > { %v2820_v43 = vpack.c.bf16 %v2805_v22, %v2804_v37  ;;  %v2789_v62 = vsel %vm1488_vm5, %v4839_v46, %v2773_v2  ;;  %v2774_v47 = vmul.f32 %v2734_v59, %v4315_v0  ;;  %v842_v3 = vshrl.u32 %v5254_v35, 7 }
 0x7d7   : > { %v2806_v53 = vsel %vm2803_vm8, %v2789_v62, 1.0 }
 0x7d8   : > { %v2790_v4 = vsel %vm1488_vm5, %v4842_v24, %v2774_v47  ;;  %3582 = vmatpush3.bf16.msra.mxu0 %v2820_v43  ;;  %v843_v43 = vadd.s32 8, %v842_v3 }
 0x7d9   : > { %v2807_v56 = vsel %vm2803_vm8, %v2790_v4, 1.0  ;;  %v2737_v60 = vpop.xlane.xlu1 %2736  ;;  %3583 = vmatprep.subr.bf16.mxu0 %v5253_v28 }
 0x7da   : > { %v2821_v54 = vpack.c.bf16 %v2807_v56, %v2806_v53  ;;  %v2775_v36 = vmul.f32 %v2737_v60, %v4333_v10  ;;  %v2828_v53 = vld [vmem:[#allocation3] sm:$0xff]  ;;  %v2829_v60 = vld [vmem:[#allocation3 + $0x8] sm:$0xff] }
 0x7dc   : > { %3584 = vmatpush3.bf16.msra.mxu0 %v2821_v54  ;;  %v2791_v0 = vsel %vm1488_vm5, %v4854_v61, %v2775_v36 }
 0x7dd   : > { %v2743_v20 = vpop.xlane.xlu1 %2742  ;;  %3585 = vmatprep.subr.bf16.mxu0 %v5253_v28  ;;  %v2808_v25 = vsel %vm2803_vm8, %v2791_v0, 1.0  ;;  %v3977_v0 = vmov (!%p3371_p6), 0.0  }
 0x7de   : > { %v2777_v45 = vmul.f32 %v2743_v20, %v4329_v9  ;;  %3609 = vmatprep.subr.bf16.mxu1 (!%p3371_p6), %v3977_v0  ;;  %3613 = vmatprep.mubr.msk.bf16.mxu1 (!%p3371_p6), %vm3978_vm13, %v3977_v0 }
 0x7df   : > { %v2740_v46 = vpop.xlane.xlu0 %2739 }
 0x7e0   : > { %v2776_v24 = vmul.f32 %v2740_v46, %v4340_v21  ;;  %v2793_v11 = vsel %vm1488_vm5, %v4868_v19, %v2777_v45  ;;  %v3916_v45 = vld [vmem:[%s5214_s16 + $0x8] sm:$0xff] (!%p3371_p6)  }
 0x7e1   : > { %v2749_v33 = vpop.xlane.xlu1 %2748 }
 0x7e2   : > { %v2792_v52 = vsel %vm1488_vm5, %v4857_v51, %v2776_v24  ;;  %v2779_v61 = vmul.f32 %v2749_v33, %v4355_v29  ;;  %v2810_v51 = vsel %vm2803_vm8, %v2793_v11, 1.0  ;;  %v3915_v24 = vld [vmem:[%s5213_s15] sm:$0xff] (!%p3371_p6)   ;;  %v3917_v33 = vld [vmem:[%s5213_s15 + $0x8] sm:$0xff] (!%p3371_p6)  }
 0x7e3   : > { %v2809_v10 = vsel %vm2803_vm8, %v2792_v52, 1.0  ;;  %v2746_v55 = vpop.xlane.xlu0 %2745  ;;  %3610 = vmatpush3.bf16.msra.mxu1 (!%p3371_p6), %v3915_v24  ;;  %v2910_v11 = vld [vmem:[#allocation2] sm:$0xff] (!%p3371_p6) }
 0x7e4   : > { %v2822_v41 = vpack.c.bf16 %v2809_v10, %v2808_v25  ;;  %v2778_v15 = vmul.f32 %v2746_v55, %v4336_v16  ;;  %v2795_v19 = vsel %vm1488_vm5, %v4879_v57, %v2779_v61  ;;  %3611 = vmatprep.subr.bf16.mxu1 (!%p3371_p6), %v3977_v0  ;;  %v3979_v55 = vmov (!%p3371_p6), 35   ;;  %v3918_v61 = vld [vmem:[%s5256_s19] sm:$0xff] (!%p3371_p6)  }
 0x7e5   : > { %v2755_v21 = vpop.xlane.xlu1 %2754  ;;  %v2812_v17 = vsel %vm2803_vm8, %v2795_v19, 1.0  ;;  %3913 = vset.pattern.permute.xlu0 (!%p3371_p6), %v3979_v55 }
 0x7e6   : > { %v2794_v9 = vsel %vm1488_vm5, %v4871_v38, %v2778_v15  ;;  %3586 = vmatpush3.bf16.msra.mxu0 %v2822_v41  ;;  %v2781_v29 = vmul.f32 %v2755_v21, %v4351_v26  ;;  %v3919_v21 = vld [vmem:[%s5256_s19 + $0x8] sm:$0xff] (!%p3371_p6)  }
 0x7e7   : > { %v2811_v14 = vsel %vm2803_vm8, %v2794_v9, 1.0  ;;  %v2752_v58 = vpop.xlane.xlu0 %2751  ;;  %3587 = vmatprep.subr.bf16.mxu0 %v5253_v28  ;;  %3612 = vmatpush3.bf16.msra.mxu1 (!%p3371_p6), %v3917_v33 }
 0x7e8   : > { %v2823_v63 = vpack.c.bf16 %v2811_v14, %v2810_v51  ;;  %v2780_v16 = vmul.f32 %v2752_v58, %v4362_v12  ;;  %v2797_v57 = vsel %vm1488_vm5, %v4892_v50, %v2781_v29 }
 0x7e9   : > { %v2761_v34 = vpop.xlane.xlu1 %2760  ;;  %v2814_v13 = vsel %vm2803_vm8, %v2797_v57, 1.0 }
 0x7ea   : > { %v2796_v38 = vsel %vm1488_vm5, %v4882_v23, %v2780_v16  ;;  %3588 = vmatpush3.bf16.msra.mxu0 %v2823_v63  ;;  %v2783_v26 = vmul.f32 %v2761_v34, %v4379_v42  ;;  %3614 = vmatmul.mubr.msk.bf16.vlgmr.msra.gmra.mrb[0].mxu1 (!%p3371_p6), %vm1488_vm5, %v2910_v11  ;;  %v3378_v34 = vld [vmem:[%s5257_s5] ss:$0 sm:$0xff] (!%p3371_p6) }
 0x7eb   : > { %v2813_v5 = vsel %vm2803_vm8, %v2796_v38, 1.0  ;;  %v2758_v6 = vpop.xlane.xlu0 %2757  ;;  %3589 = vmatprep.subr.bf16.mxu0 %v5253_v28 }
 0x7ec   : > { %v2824_v32 = vpack.c.bf16 %v2813_v5, %v2812_v17  ;;  %v2782_v12 = vmul.f32 %v2758_v6, %v4358_v31  ;;  %v2799_v31 = vsel %vm1488_vm5, %v4906_v18, %v2783_v26 }
 0x7ed   : > { %v2767_v7 = vpop.xlane.xlu1 %2766  ;;  %v2816_v37 = vsel %vm2803_vm8, %v2799_v31, 1.0 }
 0x7ee   : > { %v2798_v23 = vsel %vm1488_vm5, %v4895_v1, %v2782_v12  ;;  %3590 = vmatpush3.bf16.msra.mxu0 %v2824_v32  ;;  %v2785_v2 = vmul.f32 %v2767_v7, %v4374_v39  ;;  %v3255_v39 = vld [vmem:[%s734_s2] ss:$0 sm:$0xff]  ;;  %s5258_s2 = sld [smem:[#allocation12_spill]] (!%p3371_p6) }
 0x7ef   : > { %v2815_v49 = vsel %vm2803_vm8, %v2798_v23, 1.0  ;;  %v2764_v40 = vpop.xlane.xlu0 %2763  ;;  %3591 = vmatprep.subr.bf16.mxu0 %v5253_v28  ;;  %vm1056_vm9 = vcmp.eq.s32.totalorder %v842_v3, %v3255_v39  ;;  %vm1057_vm10 = vcmp.eq.s32.totalorder %v843_v43, %v3255_v39  ;;  %v3055_v39 = vld [vmem:[%s5259_s27] sm:$0xff] (!%p3371_p6) }
 0x7f0   : > { %v2825_v50 = vpack.c.bf16 %v2815_v49, %v2814_v13  ;;  %v2784_v42 = vmul.f32 %v2764_v40, %v4388_v48  ;;  %v2801_v18 = vsel %vm1488_vm5, %v4917_v8, %v2785_v2  ;;  %vm3369_vm11 = vmpackc.low %vm1057_vm10, %vm1056_vm9 }
 0x7f1   : > { %v2818_v47 = vsel %vm2803_vm8, %v2801_v18, 1.0 }
 0x7f2   : > { %v2800_v1 = vsel %vm1488_vm5, %v4909_v27, %v2784_v42  ;;  %3592 = vmatpush3.bf16.msra.mxu0 %v2825_v50 }
 0x7f3   : > { %v2817_v22 = vsel %vm2803_vm8, %v2800_v1, 1.0  ;;  %v2770_v59 = vpop.xlane.xlu0 %2769  ;;  %3593 = vmatprep.subr.bf16.mxu0 %v5253_v28 }
 0x7f4   : > { %v2826_v62 = vpack.c.bf16 %v2817_v22, %v2816_v37  ;;  %v2786_v48 = vmul.f32 %v2770_v59, %v4383_v44  ;;  %v3976_v44 = vmov 1.0|1.0   ;;  %v2882_v22 = vld [vmem:[%s5258_s2] sm:$0xff] (!%p3371_p6) }
 0x7f6   : > { %v2802_v27 = vsel %vm1488_vm5, %v4920_v30, %v2786_v48  ;;  %3594 = vmatpush3.bf16.msra.mxu0 %v2826_v62  ;;  %v2883_v62 = vld [vmem:[%s5258_s2 + $0x8] sm:$0xff] (!%p3371_p6) }
 0x7f7   : > { %v2819_v4 = vsel %vm2803_vm8, %v2802_v27, 1.0  ;;  %3595 = vmatprep.subr.bf16.mxu0 %v5253_v28  ;;  %v3914_v28 = vld [vmem:[%s5214_s16] sm:$0xff] (!%p3371_p6)  }
 0x7f8   : > { %v2827_v8 = vpack.c.bf16 %v2819_v4, %v2818_v47  ;;  %v3056_v47 = vld [vmem:[%s5259_s27 + $0x8] sm:$0xff] (!%p3371_p6) }
 0x7fa   : > { %3596 = vmatpush3.bf16.msra.mxu0 %v2827_v8 }
 0x7fb   : > { %3601 = vmatprep.subr.bf16.mxu0 (!%p3371_p6), %v3977_v0 }
 0x7fd   : > { %3598 = vmatmul.mubr.msk.bf16.vlgmr.msra.gmra.mrb[32].mxu0 %vm3369_vm11, %v3976_v44 }
 0x7fe   : > { %3602 = vmatpush3.bf16.msra.mxu0 (!%p3371_p6), %v3914_v28  ;;  %3605 = vmatprep.mubr.msk.bf16.mxu0 (!%p3371_p6), %vm3978_vm13, %v3977_v0 }
 0x7ff   : > { %3603 = vmatprep.subr.bf16.mxu0 (!%p3371_p6), %v3977_v0 }
 0x802   : > { %3604 = vmatpush3.bf16.msra.mxu0 (!%p3371_p6), %v3916_v45 }
 0x803   : > { %3617 = vmatprep.subr.bf16.mxu0 (!%p3371_p6), %v3977_v0 }
 0x8bd   : > { %v3025_v29 = vpop.f32.mrb[0].mxu1 (!%p3371_p6) }
 0x8be   : > { %v3615_v5 = vpop.f32.mrb[1].mxu1 (!%p3371_p6) }
 0x8bf   : > { %v3028_v32 = vpop.f32.mrb[2].mxu1 (!%p3371_p6) }
 0x8c0   : > { %v3616_v7 = vpop.f32.mrb[3].mxu1 (!%p3371_p6) }
 0x8cf   : > { %2879 = sbr.rel (%p3371_p6) target bundleno = 2740 (0xab4), region = 120 }
 0x8d0   : > { %v2864_v56 = vpop.f32.mrb[32].mxu0 }
 0x8d1   : > { %v2871_v54 = vadd.f32 %v2864_v56, %v2828_v53  ;;  %v3599_v30 = vpop.f32.mrb[33].mxu0 }
 0x8d2   : > { %v2867_v36 = vpop.f32.mrb[34].mxu0 }
 0x8d3   : > { %2874 = vst.msk [vmem:[#allocation3] sm:$0xff] %vm2873_vm12, %v2871_v54  ;;  %v2872_v20 = vadd.f32 %v2867_v36, %v2829_v60  ;;  %v3600_v46 = vpop.f32.mrb[35].mxu0 }
 0x8d5   : > { %2875 = vst.msk [vmem:[#allocation3 + $0x8] sm:$0xff] %vm2873_vm12, %v2872_v20 }
 0x8da   : > { %v2880_v52 = vld [vmem:[#allocation3] sm:$0xff] }
 0x8db   : > { %v2884_v41 = vmax.f32 %v2880_v52, 1.0 }
 0x8dc   : > { %v2881_v25 = vld [vmem:[#allocation3 + $0x8] sm:$0xff] }
 0x8dd   : > { %v2919_v10 = vpack.c.bf16 %v2881_v25, %v2880_v52  ;;  %2888 = vperm.xlu0 %3913, %v2884_v41   ;;  %v2885_v15 = vmax.f32 %v2881_v25, 1.0 }
 0x8df   : > { %3606 = vmatmul.mubr.msk.bf16.vlgmr.msra.gmra.mrb[0].mxu0 %vm1488_vm5, %v2919_v10 }
 0x8e0   : > { %3621 = vmatprep.mubr.msk.bf16.mxu0 %vm3978_vm13, %v3977_v0  ;;  %3618 = vmatpush3.bf16.msra.mxu0 %v3918_v61 }
 0x8e1   : > { %2893 = vperm.xlu0 %3913, %v2885_v15   ;;  %3619 = vmatprep.subr.bf16.mxu0 %v3977_v0 }
 0x8e4   : > { %3620 = vmatpush3.bf16.msra.mxu0 %v3919_v21 }
 0x95c   : > { %v2889_v9 = vpop.permute.xlu0 %2888 }
 0x95d   : > { %3920 = vrcp.f32 %v2889_v9 }
 0x960   : > { %v2894_v51 = vpop.permute.xlu0 %2893 }
 0x961   : > { %3922 = vrcp.f32 %v2894_v51 }
 0x967   : > { %v3921_v14 = vpop.eup %3920 }
 0x968   : > { %v2897_v58 = vmul.f32 %v3921_v14, %v2880_v52 }
 0x96a   : > { %2902 = vrot.lane.b32.xlu1 %v2897_v58, %s3980_s3 }
 0x96b   : > { %v3923_v63 = vpop.eup %3922 }
 0x96c   : > { %v2899_v19 = vmul.f32 %v3923_v63, %v2881_v25 }
 0x96e   : > { %2904 = vrot.lane.b32.xlu1 %v2899_v19, %s3980_s3  ;;  %s5260_s3 = sld [smem:[#allocation18_spill]] }
 0x974   : > { %v3384_v4 = vld [vmem:[%s5260_s3] ss:$0 sm:$0xff] }
 0x9b2   : > { %v2969_v16 = vpop.f32.mrb[0].mxu0 }
 0x9b3   : > { %v3607_v38 = vpop.f32.mrb[1].mxu0  ;;  %v3026_v17 = vadd.f32 %v3025_v29, %v2969_v16 }
 0x9b4   : > { %v2972_v6 = vpop.f32.mrb[2].mxu0 }
 0x9b5   : > { %v3608_v57 = vpop.f32.mrb[3].mxu0  ;;  %v3039_v12 = vadd.f32 %v3378_v34, %v3026_v17  ;;  %v3029_v26 = vadd.f32 %v3028_v32, %v2972_v6 }
 0x9b7   : > { %v3379_v23 = vmul.f32 -1.442695, %v3039_v12  ;;  %v3040_v13 = vadd.f32 %v3378_v34, %v3029_v26 }
 0x9b9   : > { %3924 = vpow2.f32 %v3379_v23  ;;  %v3380_v49 = vmul.f32 -1.442695, %v3040_v13 }
 0x9bb   : > { %3926 = vpow2.f32 %v3380_v49 }
 0x9c3   : > { %v3925_v40 = vpop.eup %3924 }
 0x9c4   : > { %v3047_v35 = vadd.f32 1.0, %v3925_v40 }
 0x9c5   : > { %v3927_v3 = vpop.eup %3926 }
 0x9c6   : > { %3928 = vrcp.f32 %v3047_v35  ;;  %v3048_v50 = vadd.f32 1.0, %v3927_v3 }
 0x9c8   : > { %3930 = vrcp.f32 %v3048_v50 }
 0x9d0   : > { %v3929_v31 = vpop.eup %3928 }
 0x9d1   : > { %v3053_v2 = vmul.f32 %v3929_v31, %v3039_v12 }
 0x9d2   : > { %v3931_v42 = vpop.eup %3930 }
 0x9d3   : > { %v3054_v1 = vmul.f32 %v3931_v42, %v3040_v13 }
 0x9d5   : > { %v3061_v37 = vpack.c.bf16 %v3054_v1, %v3053_v2 }
 0x9d7   : > { %3622 = vmatmul.mubr.msk.bf16.vlgmr.msra.gmra.mrb[4].mxu0 %vm1488_vm5, %v3061_v37 }
 0x9dc   : > { %v2903_v59 = vpop.permute.xlu1 %2902 }
 0x9dd   : > { %v2908_v43 = vadd.f32 %v2903_v59, %v2882_v22 }
 0x9df   : > { %3131 = vrot.lane.b32.xlu0 %v2908_v43, %s3981_s1 }
 0x9e0   : > { %v2905_v18 = vpop.permute.xlu1 %2904 }
 0x9e1   : > { %v2909_v48 = vadd.f32 %v2905_v18, %v2883_v62 }
 0x9e3   : > { %3133 = vrot.lane.b32.xlu1 %v2909_v48, %s3981_s1 }
 0xa51   : > { %v3132_v30 = vpop.permute.xlu0 %3131 }
 0xa55   : > { %v3134_v46 = vpop.permute.xlu1 %3133 }
 0xaaa   : > { %v3111_v27 = vpop.f32.mrb[4].mxu0 }
 0xaab   : > { %v3118_v8 = vadd.f32 %v3111_v27, %v3055_v39  ;;  %v3623_v44 = vpop.f32.mrb[5].mxu0 }
 0xaac   : > { %v3114_v53 = vpop.f32.mrb[6].mxu0 }
 0xaad   : > { %v3119_v56 = vadd.f32 %v3114_v53, %v3056_v47  ;;  %v3127_v60 = vadd.f32 %v3384_v4, %v3118_v8  ;;  %v3624_v54 = vpop.f32.mrb[7].mxu0 }
 0xaaf   : > { %v3128_v36 = vadd.f32 %v3384_v4, %v3119_v56  ;;  %v3137_v20 = vsel %vm1488_vm5, %v3127_v60, %v3132_v30 }
 0xab0   : > { %v3139_v28 = vsel %vm2803_vm8, %v3137_v20, 0.0 }
 0xab1   : > { %v3138_v0 = vsel %vm1488_vm5, %v3128_v36, %v3134_v46  ;;  %3141 = vst [vmem:[#allocation4] sm:$0xff] %v3139_v28 }
 0xab2   : > { %v3140_v24 = vsel %vm2803_vm8, %v3138_v0, 0.0 }
 0xab3   : > { %3142 = vst [vmem:[#allocation4 + $0x8] sm:$0xff] %v3140_v24 }
 0xab4 PF: > { %p3645_p7 = scmp.eq.s32.totalorder %s4111_s30, 1  ;;  %s3982_s0 = smov [#allocation4]  }
 0xab5   : > { %s3149_s23 = sshll.u32 %s3982_s0, 4  ;;  %s3150_s23 = int_to_ptr.vmem [resolvable:$true] %s3149_s23 }
 0xab6   : > { %s3932_s5 = scalar_lea.vmem %s3150_s23, 256  ;;  %p3939_p11 = scmp.lt.s32.totalorder %s3150_s23, %s3150_s23 }
 0xab7   : > { %p3933_p8 = scmp.ne.s32.totalorder %s3150_s23, %s3932_s5  ;;  %p3940_p12 = scmp.lt.s32.totalorder %s3932_s5, %s3932_s5 }
 0xab9   : > { %p3934_p9 = pnand %p3933_p8, %p3645_p7  ;;  %p3941_p13 = por %p3940_p12, %p3939_p11 }
 0xabb   : > { %p3935_p10 = pneg %p3934_p9 }
 0xabd   : > { %p3942_p0 = pnand %p3941_p13, %p3935_p10 }
 0xabf   : > { %3945 = shalt.err (!%p3942_p0)
}
 0xac0   : > { %s5261_s2 = sld [smem:[#allocation19_spill]] }
 0xac6   : > { %s3946_s24 = scalar_lea.hbm %s5261_s2, 256 }
 0xac7   : > { %p3947_p1 = scmp.ne.s32.totalorder %s5261_s2, %s3946_s24  ;;  %p3952_p4 = scmp.lt.u32.totalorder %s3946_s24, %s5261_s2 }
 0xac9   : > { %p3948_p2 = pnand %p3947_p1, %p3645_p7 }
 0xacb   : > { %p3949_p3 = pneg %p3948_p2 }
 0xacd   : > { %p3954_p5 = pnand %p3952_p4, %p3949_p3 }
 0xacf   : > { %3957 = shalt.err (!%p3954_p5)
}
 0xad0   : > { %s3983_s27 = smov 128   ;;  %s3984_s17 = smov 8  }
 0xad1   : > { %3642 = dma.vmem_to_hbm [thread:$0]  (%p3645_p7), %s3150_s23, 256, %s5261_s2, [#allocation5], %s3983_s27, %s3983_s27, %s3984_s17  }
 0xad2   : > { %3963 = dma.done.wait (%p3645_p7), [#allocation5], 256  }
 0xad3   : > { %3965 = vsyncadd (%p3645_p7), [#allocation5], 4294967040 }
 0xad4 PF: > { %s5262_s28 = sld [smem:[#allocation7_spill]] }
 0xada   : > { %s34_s4 = sadd.s32 1, %s5262_s28  }
 0xadb   : > { %p31_p6 = scmp.ge.s32.totalorder %s34_s4, 4  }
 0xadd   :  { %33 = sbr.rel (!%p31_p6) target bundleno = 14 (0xe), region = 153 }
 0xae4   :  { %3165 = vsyncpa [#allocation5], 1 }
 0xae5   :  { %3167 = vsyncpa [#allocation5 + $0x1], 1 }

</bundles_post_ra>
